<compile_context>
chip_gen: v5e
topology: v5e:2x2
jax: 0.10.0
libtpu: 0.0.40
codegen_flags: <defaults>
</compile_context>

<pallas_src>
import functools

import jax
import jax.numpy as jnp
from jax import lax
from jax.experimental import pallas as pl
from jax.experimental.pallas import tpu as pltpu


def mha_flash_kernel(xq_ref, xkv_ref, wq_ref, wkv_ref, wp_ref, bp_ref,
                     o_ref, q_scr, m_scr, l_scr, acc_scr, *,
                     num_heads, head_size):
    # xq_ref : (TQ, E)    x rows of the current q tile (batch dim squeezed)
    # xkv_ref: (TK, E)    x rows of the current kv tile
    # wq_ref : (E, E')    Wq with the C**-0.5 scale folded in (bf16)
    # wkv_ref: (E, 2E')   [Wk | Wv] (bf16)
    # wp_ref : (E', E)    output projection, stored (in, out) (bf16)
    # bp_ref : (1, E)     output projection bias (f32)
    # o_ref  : (TQ, E)
    # q_scr  : (TQ, E')   bf16  scaled q of the current q tile
    # m_scr  : (H, TQ, 1) f32   per-head running max
    # l_scr  : (H, TQ, 1) f32   per-head running sum
    # acc_scr: (TQ, E')   f32   per-head unnormalized p@v accumulator
    H, hs = num_heads, head_size
    Ep = H * hs
    TQ = xq_ref.shape[0]
    TK = xkv_ref.shape[0]
    qi = pl.program_id(1)
    ki = pl.program_id(2)

    @pl.when(ki == 0)
    def _init():
        # Project (pre-scaled) q once per q tile and cache it in VMEM scratch.
        xq = xq_ref[...].astype(jnp.bfloat16)
        q = jnp.dot(xq, wq_ref[...], preferred_element_type=jnp.float32)
        q_scr[...] = q.astype(jnp.bfloat16)
        m_scr[...] = jnp.full(m_scr.shape, -jnp.inf, dtype=m_scr.dtype)
        l_scr[...] = jnp.zeros(l_scr.shape, dtype=l_scr.dtype)
        acc_scr[...] = jnp.zeros(acc_scr.shape, dtype=acc_scr.dtype)

    # Skip kv tiles that lie entirely in the causally-masked (future) region.
    @pl.when(ki * TK <= qi * TQ + (TQ - 1))
    def _update():
        # Fused K/V projection of just this kv tile: one lane-dense MXU matmul.
        xkv = xkv_ref[...].astype(jnp.bfloat16)
        kv = jnp.dot(xkv, wkv_ref[...], preferred_element_type=jnp.float32)
        kv = kv.astype(jnp.bfloat16)                         # (TK, 2E')

        # Causal mask for this (q tile, kv tile) pair, hoisted out of head loop.
        row = qi * TQ + lax.broadcasted_iota(jnp.int32, (TQ, TK), 0)
        col = ki * TK + lax.broadcasted_iota(jnp.int32, (TQ, TK), 1)
        causal = row >= col

        for h in range(H):                     # small static head count: unrolled
            sl = slice(h * hs, (h + 1) * hs)
            q_h = q_scr[:, sl]                                # (TQ, hs) bf16
            k_h = kv[:, sl]                                   # (TK, hs) bf16
            v_h = kv[:, Ep + h * hs:Ep + (h + 1) * hs]        # (TK, hs) bf16
            # q @ k^T without an explicit transpose (contract last dims), f32 acc.
            s = lax.dot_general(q_h, k_h, (((1,), (1,)), ((), ())),
                                preferred_element_type=jnp.float32)  # (TQ, TK)
            s = jnp.where(causal, s, -jnp.inf)
            m_prev = m_scr[h]                                 # (TQ, 1)
            m_new = jnp.maximum(m_prev, jnp.max(s, axis=-1, keepdims=True))
            alpha = jnp.exp(m_prev - m_new)
            p = jnp.exp(s - m_new)                            # unnormalized, f32
            # TODO(synk): attention dropout on p omitted (eval-mode identity).
            l_scr[h] = alpha * l_scr[h] + jnp.sum(p, axis=-1, keepdims=True)
            acc_scr[:, sl] = alpha * acc_scr[:, sl] + jnp.dot(
                p.astype(jnp.bfloat16), v_h, preferred_element_type=jnp.float32)
            m_scr[h] = m_new

    @pl.when(ki == pl.num_programs(2) - 1)
    def _finalize():
        # Deferred softmax normalization: EUP reciprocal, O(TQ*E') multiplies.
        for h in range(H):
            sl = slice(h * hs, (h + 1) * hs)
            acc_scr[:, sl] = acc_scr[:, sl] * pl.reciprocal(l_scr[h], approx=True)
        # Single lane-dense output projection from the VMEM accumulator.
        y = jnp.dot(acc_scr[...].astype(jnp.bfloat16), wp_ref[...],
                    preferred_element_type=jnp.float32) + bp_ref[...]
        o_ref[...] = y.astype(o_ref.dtype)


def multi_head_attention(x, wq, wk, wv, wp, bp, *, num_heads, head_size,
                         q_tile=128, kv_tile=128):
    """x: (B, T, E). wq/wk/wv: (E, H*hs), wp: (H*hs, E) — stored (in, out) so the
    hot path is x @ W.  bp: (E,)."""
    B, T, E = x.shape
    Ep = num_heads * head_size
    TQ = min(q_tile, T)
    TK = min(kv_tile, T)
    assert T % TQ == 0 and T % TK == 0, "T must be divisible by the tile sizes"
    n_q, n_kv = T // TQ, T // TK
    scale = float(E) ** -0.5   # torch code scales by C**-0.5 with C = num_embeddings

    # bf16 matmul operands (MXU-native on v5e/v6e/v7x; halves weight VMEM + DMA).
    # The attention scale is folded into Wq once here (free at runtime).
    wq_b = (wq * scale).astype(jnp.bfloat16)                          # (E, E')
    wkv_b = jnp.concatenate([wk, wv], axis=-1).astype(jnp.bfloat16)   # (E, 2E')
    wp_b = wp.astype(jnp.bfloat16)                                    # (E', E)
    bp2 = bp.reshape(1, E).astype(jnp.float32)

    kernel = functools.partial(mha_flash_kernel, num_heads=num_heads,
                               head_size=head_size)

    itemsize = x.dtype.itemsize
    flops = int(2 * B * T * E * 3 * Ep                        # QKV projections
                + 4 * B * num_heads * T * T * head_size       # scores + p@v
                + 2 * B * T * Ep * E)                         # output projection
    bytes_accessed = int(3 * B * T * E * itemsize             # x (q+kv streams) + out
                         + 2 * (wq_b.size + wkv_b.size + wp_b.size)  # bf16 weights
                         + 4 * bp2.size)
    cost = pl.CostEstimate(flops=flops,
                           transcendentals=int(B * num_heads * T * T),
                           bytes_accessed=bytes_accessed)

    def build(single_buffer_weights):
        wkwargs = ({"pipeline_mode": pl.Buffered(1)} if single_buffer_weights
                   else {})

        def wspec(shape):  # VMEM-resident weight: same block for every grid step
            return pl.BlockSpec(shape, lambda b, qi, ki: (0,) * len(shape),
                                **wkwargs)

        return pl.pallas_call(
            kernel,
            out_shape=jax.ShapeDtypeStruct((B, T, E), x.dtype),
            grid=(B, n_q, n_kv),
            in_specs=[
                pl.BlockSpec((pl.Squeezed(), TQ, E), lambda b, qi, ki: (b, qi, 0)),
                pl.BlockSpec((pl.Squeezed(), TK, E), lambda b, qi, ki: (b, ki, 0)),
                wspec((E, Ep)),          # Wq (scaled)
                wspec((E, 2 * Ep)),      # [Wk | Wv]
                wspec((Ep, E)),          # Wproj
                wspec((1, E)),           # bproj
            ],
            out_specs=pl.BlockSpec((pl.Squeezed(), TQ, E),
                                   lambda b, qi, ki: (b, qi, 0)),
            scratch_shapes=[
                pltpu.VMEM((TQ, Ep), jnp.bfloat16),            # cached scaled q
                pltpu.VMEM((num_heads, TQ, 1), jnp.float32),   # running max m
                pltpu.VMEM((num_heads, TQ, 1), jnp.float32),   # running sum l
                pltpu.VMEM((TQ, Ep), jnp.float32),             # p@v accumulator
            ],
            compiler_params=pltpu.CompilerParams(
                dimension_semantics=("parallel", "parallel", "arbitrary"),
                vmem_limit_bytes=48 * 1024 * 1024),  # budget fits v7x's 64 MiB
            cost_estimate=cost,
        )

    args = (x, x, wq_b, wkv_b, wp_b, bp2)
    try:
        return build(True)(*args)      # single-buffered resident weights
    except Exception:
        # This jax build rejects pipeline_mode=pl.Buffered(1) on pallas_call
        # BlockSpecs; fall back to default double-buffered weights (correct,
        # just 2x resident-weight VMEM).
        return build(False)(*args)


def mha_reference(x, wq, wk, wv, wp, bp, num_heads, head_size):
    """Plain-JAX (f32) reference mirroring the PyTorch module (eval mode)."""
    B, T, E = x.shape
    scale = float(E) ** -0.5
    tril = jnp.tril(jnp.ones((T, T), dtype=bool))
    outs = []
    for h in range(num_heads):
        q = x @ wq[:, h * head_size:(h + 1) * head_size]
        k = x @ wk[:, h * head_size:(h + 1) * head_size]
        v = x @ wv[:, h * head_size:(h + 1) * head_size]
        s = (q @ jnp.swapaxes(k, -1, -2)) * scale
        s = jnp.where(tril, s, -jnp.inf)
        p = jax.nn.softmax(s, axis=-1)
        outs.append(p @ v)
    return jnp.concatenate(outs, axis=-1) @ wp + bp


if __name__ == "__main__":
    # batch=2, seq=block_size=8, num_embeddings=32, num_heads=4, head_size=8.
    B, T, E = 2, 8, 32
    num_heads, head_size = 4, 8

    key = jax.random.PRNGKey(0)
    kx, kq, kk, kv, kp, kb = jax.random.split(key, 6)

    x = jax.random.normal(kx, (B, T, E), dtype=jnp.float32)

    # Deterministic parameter init (PyTorch Linear default-like uniform),
    # stored already transposed to (in, out) for x @ W.
    bound = 1.0 / (E ** 0.5)
    wq = jax.random.uniform(kq, (E, num_heads * head_size), jnp.float32, -bound, bound)
    wk = jax.random.uniform(kk, (E, num_heads * head_size), jnp.float32, -bound, bound)
    wv = jax.random.uniform(kv, (E, num_heads * head_size), jnp.float32, -bound, bound)
    wp = jax.random.uniform(kp, (num_heads * head_size, E), jnp.float32, -bound, bound)
    bp = jax.random.uniform(kb, (E,), jnp.float32, -bound, bound)

    out = multi_head_attention(x, wq, wk, wv, wp, bp,
                               num_heads=num_heads, head_size=head_size)
    out = jax.block_until_ready(out)

    ref = mha_reference(x, wq, wk, wv, wp, bp, num_heads, head_size)
    assert out.shape == (B, T, E)
    # Tolerance loosened vs the all-f32 version: matmul operands are bf16
    # (f32 accumulation) and the softmax denominator uses the approx EUP
    # reciprocal, so ~0.5-1% relative error is expected.
    assert jnp.allclose(out, ref, atol=3e-2, rtol=3e-2), "mismatch vs reference"

    print("KERNEL_OK")
</pallas_src>

<mosaic_0001>
module attributes {stable_mosaic.version = 11 : i64} {
  func.func @mha_flash_kernel(%arg0: i32, %arg1: i32, %arg2: i32, %arg3: memref<1x8x32xf32, #tpu.memory_space<vmem>>, %arg4: memref<1x8x32xf32, #tpu.memory_space<vmem>>, %arg5: memref<32x32xbf16, #tpu.memory_space<vmem>>, %arg6: memref<32x64xbf16, #tpu.memory_space<vmem>>, %arg7: memref<32x32xbf16, #tpu.memory_space<vmem>>, %arg8: memref<1x32xf32, #tpu.memory_space<vmem>>, %arg9: memref<1x8x32xf32, #tpu.memory_space<vmem>>, %arg10: memref<8x32xbf16, #tpu.memory_space<vmem>>, %arg11: memref<4x8x1xf32, #tpu.memory_space<vmem>>, %arg12: memref<4x8x1xf32, #tpu.memory_space<vmem>>, %arg13: memref<8x32xf32, #tpu.memory_space<vmem>>) attributes {dimension_semantics = [#tpu.dimension_semantics<parallel>, #tpu.dimension_semantics<parallel>, #tpu.dimension_semantics<arbitrary>], iteration_bounds = array<i64: 2, 1, 1>, scalar_prefetch = 0 : i64, scratch_operands = 4 : i64, tpu.core_type = #tpu.core_type<tc>, window_params = [{transform_indices = @transform_0, window_bounds = array<i64: 1, 8, 32>}, {transform_indices = @transform_1, window_bounds = array<i64: 1, 8, 32>}, {pipeline_mode = #tpu.pipeline_mode<synchronous>, transform_indices = @transform_2, window_bounds = array<i64: 32, 32>}, {pipeline_mode = #tpu.pipeline_mode<synchronous>, transform_indices = @transform_3, window_bounds = array<i64: 32, 64>}, {pipeline_mode = #tpu.pipeline_mode<synchronous>, transform_indices = @transform_4, window_bounds = array<i64: 32, 32>}, {pipeline_mode = #tpu.pipeline_mode<synchronous>, transform_indices = @transform_5, window_bounds = array<i64: 1, 32>}, {transform_indices = @transform_6, window_bounds = array<i64: 1, 8, 32>}]} {
    %c0_i32 = arith.constant 0 : i32
    %0 = arith.cmpi eq, %arg2, %c0_i32 : i32
    %1 = arith.extui %0 : i1 to i32
    %c0_i32_0 = arith.constant 0 : i32
    %2 = arith.cmpi ne, %1, %c0_i32_0 : i32
    scf.if %2 {
      %c0 = arith.constant 0 : index
      %c0_5 = arith.constant 0 : index
      %c0_6 = arith.constant 0 : index
      %12 = vector.load %arg3[%c0, %c0_5, %c0_6] : memref<1x8x32xf32, #tpu.memory_space<vmem>>, vector<1x8x32xf32>
      %13 = vector.shape_cast %12 : vector<1x8x32xf32> to vector<8x32xf32>
      %14 = arith.truncf %13 : vector<8x32xf32> to vector<8x32xbf16>
      %c0_7 = arith.constant 0 : index
      %c0_8 = arith.constant 0 : index
      %15 = vector.load %arg5[%c0_7, %c0_8] : memref<32x32xbf16, #tpu.memory_space<vmem>>, vector<32x32xbf16>
      %cst = arith.constant dense<0.000000e+00> : vector<8x32xf32>
      %16 = tpu.matmul %14, %15, %cst {dimension_numbers = #tpu.dot_dimension_numbers<[1], [0], [0], [1], [0, 0, 1, 1], [], []>} : vector<8x32xbf16>, vector<32x32xbf16>, vector<8x32xf32> -> vector<8x32xf32>
      %17 = arith.truncf %16 : vector<8x32xf32> to vector<8x32xbf16>
      %c0_9 = arith.constant 0 : index
      %c0_10 = arith.constant 0 : index
      %18 = vector.load %arg10[%c0_9, %c0_10] : memref<8x32xbf16, #tpu.memory_space<vmem>>, vector<8x32xbf16>
      tpu.vector_store %arg10[%c0_9, %c0_10], %17 {strides = array<i32>} : memref<8x32xbf16, #tpu.memory_space<vmem>>, vector<8x32xbf16>,
      %cst_11 = arith.constant 0xFF800000 : f32
      %19 = vector.broadcast %cst_11 : f32 to vector<4x8x1xf32>
      %c0_12 = arith.constant 0 : index
      %c0_13 = arith.constant 0 : index
      %c0_14 = arith.constant 0 : index
      %20 = vector.load %arg11[%c0_12, %c0_13, %c0_14] : memref<4x8x1xf32, #tpu.memory_space<vmem>>, vector<4x8x1xf32>
      tpu.vector_store %arg11[%c0_12, %c0_13, %c0_14], %19 {strides = array<i32>} : memref<4x8x1xf32, #tpu.memory_space<vmem>>, vector<4x8x1xf32>,
      %cst_15 = arith.constant 0.000000e+00 : f32
      %21 = vector.broadcast %cst_15 : f32 to vector<4x8x1xf32>
      %c0_16 = arith.constant 0 : index
      %c0_17 = arith.constant 0 : index
      %c0_18 = arith.constant 0 : index
      %22 = vector.load %arg12[%c0_16, %c0_17, %c0_18] : memref<4x8x1xf32, #tpu.memory_space<vmem>>, vector<4x8x1xf32>
      tpu.vector_store %arg12[%c0_16, %c0_17, %c0_18], %21 {strides = array<i32>} : memref<4x8x1xf32, #tpu.memory_space<vmem>>, vector<4x8x1xf32>,
      %cst_19 = arith.constant 0.000000e+00 : f32
      %23 = vector.broadcast %cst_19 : f32 to vector<8x32xf32>
      %c0_20 = arith.constant 0 : index
      %c0_21 = arith.constant 0 : index
      %24 = vector.load %arg13[%c0_20, %c0_21] : memref<8x32xf32, #tpu.memory_space<vmem>>, vector<8x32xf32>
      tpu.vector_store %arg13[%c0_20, %c0_21], %23 {strides = array<i32>} : memref<8x32xf32, #tpu.memory_space<vmem>>, vector<8x32xf32>,
    } else {
    }
    %c8_i32 = arith.constant 8 : i32
    %3 = arith.muli %arg2, %c8_i32 : i32
    %c8_i32_1 = arith.constant 8 : i32
    %4 = arith.muli %arg1, %c8_i32_1 : i32
    %c7_i32 = arith.constant 7 : i32
    %5 = arith.addi %4, %c7_i32 : i32
    %6 = arith.cmpi sle, %3, %5 : i32
    %7 = arith.extui %6 : i1 to i32
    %c0_i32_2 = arith.constant 0 : i32
    %8 = arith.cmpi ne, %7, %c0_i32_2 : i32
    scf.if %8 {
      %c0 = arith.constant 0 : index
      %c0_5 = arith.constant 0 : index
      %c0_6 = arith.constant 0 : index
      %12 = vector.load %arg4[%c0, %c0_5, %c0_6] : memref<1x8x32xf32, #tpu.memory_space<vmem>>, vector<1x8x32xf32>
      %13 = vector.shape_cast %12 : vector<1x8x32xf32> to vector<8x32xf32>
      %14 = arith.truncf %13 : vector<8x32xf32> to vector<8x32xbf16>
      %c0_7 = arith.constant 0 : index
      %c0_8 = arith.constant 0 : index
      %15 = vector.load %arg6[%c0_7, %c0_8] : memref<32x64xbf16, #tpu.memory_space<vmem>>, vector<32x64xbf16>
      %cst = arith.constant dense<0.000000e+00> : vector<8x64xf32>
      %16 = tpu.matmul %14, %15, %cst {dimension_numbers = #tpu.dot_dimension_numbers<[1], [0], [0], [1], [0, 0, 1, 1], [], []>} : vector<8x32xbf16>, vector<32x64xbf16>, vector<8x64xf32> -> vector<8x64xf32>
      %17 = arith.truncf %16 : vector<8x64xf32> to vector<8x64xbf16>
      %c8_i32_9 = arith.constant 8 : i32
      %18 = arith.muli %arg1, %c8_i32_9 : i32
      %19 = tpu.iota {dimensions = array<i32: 0>} : vector<8x8xi32>
      %20 = vector.broadcast %18 : i32 to vector<8x8xi32>
      %21 = arith.addi %20, %19 : vector<8x8xi32>
      %c8_i32_10 = arith.constant 8 : i32
      %22 = arith.muli %arg2, %c8_i32_10 : i32
      %23 = tpu.iota {dimensions = array<i32: 1>} : vector<8x8xi32>
      %24 = vector.broadcast %22 : i32 to vector<8x8xi32>
      %25 = arith.addi %24, %23 : vector<8x8xi32>
      %26 = arith.cmpi sge, %21, %25 : vector<8x8xi32>
      %c0_11 = arith.constant 0 : index
      %c0_12 = arith.constant 0 : index
      %27 = vector.load %arg10[%c0_11, %c0_12] : memref<8x32xbf16, #tpu.memory_space<vmem>>, vector<8x8xbf16>
      %28 = vector.extract_strided_slice %17 {offsets = [0, 0], sizes = [8, 8], strides = [1, 1]} : vector<8x64xbf16> to vector<8x8xbf16>
      %29 = vector.extract_strided_slice %17 {offsets = [0, 32], sizes = [8, 8], strides = [1, 1]} : vector<8x64xbf16> to vector<8x8xbf16>
      %cst_13 = arith.constant dense<0.000000e+00> : vector<8x8xf32>
      %30 = tpu.matmul %27, %28, %cst_13 {dimension_numbers = #tpu.dot_dimension_numbers<[1], [1], [0], [0], [0, 0, 1, 0], [], []>} : vector<8x8xbf16>, vector<8x8xbf16>, vector<8x8xf32> -> vector<8x8xf32>
      %cst_14 = arith.constant 0xFF800000 : f32
      %31 = vector.broadcast %cst_14 : f32 to vector<8x8xf32>
      %32 = arith.select %26, %30, %31 : vector<8x8xi1>, vector<8x8xf32>
      %c0_15 = arith.constant 0 : index
      %c0_16 = arith.constant 0 : index
      %c0_17 = arith.constant 0 : index
      %33 = vector.load %arg11[%c0_15, %c0_16, %c0_17] : memref<4x8x1xf32, #tpu.memory_space<vmem>>, vector<1x8x1xf32>
      %34 = vector.shape_cast %33 : vector<1x8x1xf32> to vector<8x1xf32>
      %cst_18 = arith.constant dense<0xFF800000> : vector<8xf32>
      %35 = vector.multi_reduction <maximumf>, %32, %cst_18 [1] : vector<8x8xf32> to vector<8xf32>
      %36 = vector.shape_cast %35 : vector<8xf32> to vector<8x1xf32>
      %37 = arith.maximumf %34, %36 : vector<8x1xf32>
      %38 = arith.subf %34, %37 : vector<8x1xf32>
      %39 = math.exp %38 : vector<8x1xf32>
      %40 = vector.broadcast %37 : vector<8x1xf32> to vector<8x8xf32>
      %41 = arith.subf %32, %40 : vector<8x8xf32>
      %42 = math.exp %41 : vector<8x8xf32>
      %c0_19 = arith.constant 0 : index
      %c0_20 = arith.constant 0 : index
      %c0_21 = arith.constant 0 : index
      %43 = vector.load %arg12[%c0_19, %c0_20, %c0_21] : memref<4x8x1xf32, #tpu.memory_space<vmem>>, vector<1x8x1xf32>
      %44 = vector.shape_cast %43 : vector<1x8x1xf32> to vector<8x1xf32>
      %45 = arith.mulf %39, %44 : vector<8x1xf32>
      %cst_22 = arith.constant dense<0.000000e+00> : vector<8xf32>
      %46 = vector.multi_reduction <add>, %42, %cst_22 [1] : vector<8x8xf32> to vector<8xf32>
      %47 = vector.shape_cast %46 : vector<8xf32> to vector<8x1xf32>
      %48 = arith.addf %45, %47 : vector<8x1xf32>
      %c0_23 = arith.constant 0 : index
      %c0_24 = arith.constant 0 : index
      %c0_25 = arith.constant 0 : index
      %49 = vector.load %arg12[%c0_23, %c0_24, %c0_25] : memref<4x8x1xf32, #tpu.memory_space<vmem>>, vector<1x8x1xf32>
      %50 = vector.shape_cast %49 : vector<1x8x1xf32> to vector<8x1xf32>
      %51 = vector.shape_cast %48 : vector<8x1xf32> to vector<1x8x1xf32>
      tpu.vector_store %arg12[%c0_23, %c0_24, %c0_25], %51 {strides = array<i32>} : memref<4x8x1xf32, #tpu.memory_space<vmem>>, vector<1x8x1xf32>,
      %c0_26 = arith.constant 0 : index
      %c0_27 = arith.constant 0 : index
      %52 = vector.load %arg13[%c0_26, %c0_27] : memref<8x32xf32, #tpu.memory_space<vmem>>, vector<8x8xf32>
      %53 = vector.broadcast %39 : vector<8x1xf32> to vector<8x8xf32>
      %54 = arith.mulf %53, %52 : vector<8x8xf32>
      %55 = arith.truncf %42 : vector<8x8xf32> to vector<8x8xbf16>
      %cst_28 = arith.constant dense<0.000000e+00> : vector<8x8xf32>
      %56 = tpu.matmul %55, %29, %cst_28 {dimension_numbers = #tpu.dot_dimension_numbers<[1], [0], [0], [1], [0, 0, 1, 1], [], []>} : vector<8x8xbf16>, vector<8x8xbf16>, vector<8x8xf32> -> vector<8x8xf32>
      %57 = arith.addf %54, %56 : vector<8x8xf32>
      %c0_29 = arith.constant 0 : index
      %c0_30 = arith.constant 0 : index
      %58 = vector.load %arg13[%c0_29, %c0_30] : memref<8x32xf32, #tpu.memory_space<vmem>>, vector<8x8xf32>
      tpu.vector_store %arg13[%c0_29, %c0_30], %57 {strides = array<i32>} : memref<8x32xf32, #tpu.memory_space<vmem>>, vector<8x8xf32>,
      %c0_31 = arith.constant 0 : index
      %c0_32 = arith.constant 0 : index
      %c0_33 = arith.constant 0 : index
      %59 = vector.load %arg11[%c0_31, %c0_32, %c0_33] : memref<4x8x1xf32, #tpu.memory_space<vmem>>, vector<1x8x1xf32>
      %60 = vector.shape_cast %59 : vector<1x8x1xf32> to vector<8x1xf32>
      %61 = vector.shape_cast %37 : vector<8x1xf32> to vector<1x8x1xf32>
      tpu.vector_store %arg11[%c0_31, %c0_32, %c0_33], %61 {strides = array<i32>} : memref<4x8x1xf32, #tpu.memory_space<vmem>>, vector<1x8x1xf32>,
      %c0_34 = arith.constant 0 : index
      %c8 = arith.constant 8 : index
      %62 = vector.load %arg10[%c0_34, %c8] : memref<8x32xbf16, #tpu.memory_space<vmem>>, vector<8x8xbf16>
      %63 = vector.extract_strided_slice %17 {offsets = [0, 8], sizes = [8, 8], strides = [1, 1]} : vector<8x64xbf16> to vector<8x8xbf16>
      %64 = vector.extract_strided_slice %17 {offsets = [0, 40], sizes = [8, 8], strides = [1, 1]} : vector<8x64xbf16> to vector<8x8xbf16>
      %cst_35 = arith.constant dense<0.000000e+00> : vector<8x8xf32>
      %65 = tpu.matmul %62, %63, %cst_35 {dimension_numbers = #tpu.dot_dimension_numbers<[1], [1], [0], [0], [0, 0, 1, 0], [], []>} : vector<8x8xbf16>, vector<8x8xbf16>, vector<8x8xf32> -> vector<8x8xf32>
      %cst_36 = arith.constant 0xFF800000 : f32
      %66 = vector.broadcast %cst_36 : f32 to vector<8x8xf32>
      %67 = arith.select %26, %65, %66 : vector<8x8xi1>, vector<8x8xf32>
      %c1 = arith.constant 1 : index
      %c0_37 = arith.constant 0 : index
      %c0_38 = arith.constant 0 : index
      %68 = vector.load %arg11[%c1, %c0_37, %c0_38] : memref<4x8x1xf32, #tpu.memory_space<vmem>>, vector<1x8x1xf32>
      %69 = vector.shape_cast %68 : vector<1x8x1xf32> to vector<8x1xf32>
      %cst_39 = arith.constant dense<0xFF800000> : vector<8xf32>
      %70 = vector.multi_reduction <maximumf>, %67, %cst_39 [1] : vector<8x8xf32> to vector<8xf32>
      %71 = vector.shape_cast %70 : vector<8xf32> to vector<8x1xf32>
      %72 = arith.maximumf %69, %71 : vector<8x1xf32>
      %73 = arith.subf %69, %72 : vector<8x1xf32>
      %74 = math.exp %73 : vector<8x1xf32>
      %75 = vector.broadcast %72 : vector<8x1xf32> to vector<8x8xf32>
      %76 = arith.subf %67, %75 : vector<8x8xf32>
      %77 = math.exp %76 : vector<8x8xf32>
      %c1_40 = arith.constant 1 : index
      %c0_41 = arith.constant 0 : index
      %c0_42 = arith.constant 0 : index
      %78 = vector.load %arg12[%c1_40, %c0_41, %c0_42] : memref<4x8x1xf32, #tpu.memory_space<vmem>>, vector<1x8x1xf32>
      %79 = vector.shape_cast %78 : vector<1x8x1xf32> to vector<8x1xf32>
      %80 = arith.mulf %74, %79 : vector<8x1xf32>
      %cst_43 = arith.constant dense<0.000000e+00> : vector<8xf32>
      %81 = vector.multi_reduction <add>, %77, %cst_43 [1] : vector<8x8xf32> to vector<8xf32>
      %82 = vector.shape_cast %81 : vector<8xf32> to vector<8x1xf32>
      %83 = arith.addf %80, %82 : vector<8x1xf32>
      %c1_44 = arith.constant 1 : index
      %c0_45 = arith.constant 0 : index
      %c0_46 = arith.constant 0 : index
      %84 = vector.load %arg12[%c1_44, %c0_45, %c0_46] : memref<4x8x1xf32, #tpu.memory_space<vmem>>, vector<1x8x1xf32>
      %85 = vector.shape_cast %84 : vector<1x8x1xf32> to vector<8x1xf32>
      %86 = vector.shape_cast %83 : vector<8x1xf32> to vector<1x8x1xf32>
      tpu.vector_store %arg12[%c1_44, %c0_45, %c0_46], %86 {strides = array<i32>} : memref<4x8x1xf32, #tpu.memory_space<vmem>>, vector<1x8x1xf32>,
      %c0_47 = arith.constant 0 : index
      %c8_48 = arith.constant 8 : index
      %87 = vector.load %arg13[%c0_47, %c8_48] : memref<8x32xf32, #tpu.memory_space<vmem>>, vector<8x8xf32>
      %88 = vector.broadcast %74 : vector<8x1xf32> to vector<8x8xf32>
      %89 = arith.mulf %88, %87 : vector<8x8xf32>
      %90 = arith.truncf %77 : vector<8x8xf32> to vector<8x8xbf16>
      %cst_49 = arith.constant dense<0.000000e+00> : vector<8x8xf32>
      %91 = tpu.matmul %90, %64, %cst_49 {dimension_numbers = #tpu.dot_dimension_numbers<[1], [0], [0], [1], [0, 0, 1, 1], [], []>} : vector<8x8xbf16>, vector<8x8xbf16>, vector<8x8xf32> -> vector<8x8xf32>
      %92 = arith.addf %89, %91 : vector<8x8xf32>
      %c0_50 = arith.constant 0 : index
      %c8_51 = arith.constant 8 : index
      %93 = vector.load %arg13[%c0_50, %c8_51] : memref<8x32xf32, #tpu.memory_space<vmem>>, vector<8x8xf32>
      tpu.vector_store %arg13[%c0_50, %c8_51], %92 {strides = array<i32>} : memref<8x32xf32, #tpu.memory_space<vmem>>, vector<8x8xf32>,
      %c1_52 = arith.constant 1 : index
      %c0_53 = arith.constant 0 : index
      %c0_54 = arith.constant 0 : index
      %94 = vector.load %arg11[%c1_52, %c0_53, %c0_54] : memref<4x8x1xf32, #tpu.memory_space<vmem>>, vector<1x8x1xf32>
      %95 = vector.shape_cast %94 : vector<1x8x1xf32> to vector<8x1xf32>
      %96 = vector.shape_cast %72 : vector<8x1xf32> to vector<1x8x1xf32>
      tpu.vector_store %arg11[%c1_52, %c0_53, %c0_54], %96 {strides = array<i32>} : memref<4x8x1xf32, #tpu.memory_space<vmem>>, vector<1x8x1xf32>,
      %c0_55 = arith.constant 0 : index
      %c16 = arith.constant 16 : index
      %97 = vector.load %arg10[%c0_55, %c16] : memref<8x32xbf16, #tpu.memory_space<vmem>>, vector<8x8xbf16>
      %98 = vector.extract_strided_slice %17 {offsets = [0, 16], sizes = [8, 8], strides = [1, 1]} : vector<8x64xbf16> to vector<8x8xbf16>
      %99 = vector.extract_strided_slice %17 {offsets = [0, 48], sizes = [8, 8], strides = [1, 1]} : vector<8x64xbf16> to vector<8x8xbf16>
      %cst_56 = arith.constant dense<0.000000e+00> : vector<8x8xf32>
      %100 = tpu.matmul %97, %98, %cst_56 {dimension_numbers = #tpu.dot_dimension_numbers<[1], [1], [0], [0], [0, 0, 1, 0], [], []>} : vector<8x8xbf16>, vector<8x8xbf16>, vector<8x8xf32> -> vector<8x8xf32>
      %cst_57 = arith.constant 0xFF800000 : f32
      %101 = vector.broadcast %cst_57 : f32 to vector<8x8xf32>
      %102 = arith.select %26, %100, %101 : vector<8x8xi1>, vector<8x8xf32>
      %c2 = arith.constant 2 : index
      %c0_58 = arith.constant 0 : index
      %c0_59 = arith.constant 0 : index
      %103 = vector.load %arg11[%c2, %c0_58, %c0_59] : memref<4x8x1xf32, #tpu.memory_space<vmem>>, vector<1x8x1xf32>
      %104 = vector.shape_cast %103 : vector<1x8x1xf32> to vector<8x1xf32>
      %cst_60 = arith.constant dense<0xFF800000> : vector<8xf32>
      %105 = vector.multi_reduction <maximumf>, %102, %cst_60 [1] : vector<8x8xf32> to vector<8xf32>
      %106 = vector.shape_cast %105 : vector<8xf32> to vector<8x1xf32>
      %107 = arith.maximumf %104, %106 : vector<8x1xf32>
      %108 = arith.subf %104, %107 : vector<8x1xf32>
      %109 = math.exp %108 : vector<8x1xf32>
      %110 = vector.broadcast %107 : vector<8x1xf32> to vector<8x8xf32>
      %111 = arith.subf %102, %110 : vector<8x8xf32>
      %112 = math.exp %111 : vector<8x8xf32>
      %c2_61 = arith.constant 2 : index
      %c0_62 = arith.constant 0 : index
      %c0_63 = arith.constant 0 : index
      %113 = vector.load %arg12[%c2_61, %c0_62, %c0_63] : memref<4x8x1xf32, #tpu.memory_space<vmem>>, vector<1x8x1xf32>
      %114 = vector.shape_cast %113 : vector<1x8x1xf32> to vector<8x1xf32>
      %115 = arith.mulf %109, %114 : vector<8x1xf32>
      %cst_64 = arith.constant dense<0.000000e+00> : vector<8xf32>
      %116 = vector.multi_reduction <add>, %112, %cst_64 [1] : vector<8x8xf32> to vector<8xf32>
      %117 = vector.shape_cast %116 : vector<8xf32> to vector<8x1xf32>
      %118 = arith.addf %115, %117 : vector<8x1xf32>
      %c2_65 = arith.constant 2 : index
      %c0_66 = arith.constant 0 : index
      %c0_67 = arith.constant 0 : index
      %119 = vector.load %arg12[%c2_65, %c0_66, %c0_67] : memref<4x8x1xf32, #tpu.memory_space<vmem>>, vector<1x8x1xf32>
      %120 = vector.shape_cast %119 : vector<1x8x1xf32> to vector<8x1xf32>
      %121 = vector.shape_cast %118 : vector<8x1xf32> to vector<1x8x1xf32>
      tpu.vector_store %arg12[%c2_65, %c0_66, %c0_67], %121 {strides = array<i32>} : memref<4x8x1xf32, #tpu.memory_space<vmem>>, vector<1x8x1xf32>,
      %c0_68 = arith.constant 0 : index
      %c16_69 = arith.constant 16 : index
      %122 = vector.load %arg13[%c0_68, %c16_69] : memref<8x32xf32, #tpu.memory_space<vmem>>, vector<8x8xf32>
      %123 = vector.broadcast %109 : vector<8x1xf32> to vector<8x8xf32>
      %124 = arith.mulf %123, %122 : vector<8x8xf32>
      %125 = arith.truncf %112 : vector<8x8xf32> to vector<8x8xbf16>
      %cst_70 = arith.constant dense<0.000000e+00> : vector<8x8xf32>
      %126 = tpu.matmul %125, %99, %cst_70 {dimension_numbers = #tpu.dot_dimension_numbers<[1], [0], [0], [1], [0, 0, 1, 1], [], []>} : vector<8x8xbf16>, vector<8x8xbf16>, vector<8x8xf32> -> vector<8x8xf32>
      %127 = arith.addf %124, %126 : vector<8x8xf32>
      %c0_71 = arith.constant 0 : index
      %c16_72 = arith.constant 16 : index
      %128 = vector.load %arg13[%c0_71, %c16_72] : memref<8x32xf32, #tpu.memory_space<vmem>>, vector<8x8xf32>
      tpu.vector_store %arg13[%c0_71, %c16_72], %127 {strides = array<i32>} : memref<8x32xf32, #tpu.memory_space<vmem>>, vector<8x8xf32>,
      %c2_73 = arith.constant 2 : index
      %c0_74 = arith.constant 0 : index
      %c0_75 = arith.constant 0 : index
      %129 = vector.load %arg11[%c2_73, %c0_74, %c0_75] : memref<4x8x1xf32, #tpu.memory_space<vmem>>, vector<1x8x1xf32>
      %130 = vector.shape_cast %129 : vector<1x8x1xf32> to vector<8x1xf32>
      %131 = vector.shape_cast %107 : vector<8x1xf32> to vector<1x8x1xf32>
      tpu.vector_store %arg11[%c2_73, %c0_74, %c0_75], %131 {strides = array<i32>} : memref<4x8x1xf32, #tpu.memory_space<vmem>>, vector<1x8x1xf32>,
      %c0_76 = arith.constant 0 : index
      %c24 = arith.constant 24 : index
      %132 = vector.load %arg10[%c0_76, %c24] : memref<8x32xbf16, #tpu.memory_space<vmem>>, vector<8x8xbf16>
      %133 = vector.extract_strided_slice %17 {offsets = [0, 24], sizes = [8, 8], strides = [1, 1]} : vector<8x64xbf16> to vector<8x8xbf16>
      %134 = vector.extract_strided_slice %17 {offsets = [0, 56], sizes = [8, 8], strides = [1, 1]} : vector<8x64xbf16> to vector<8x8xbf16>
      %cst_77 = arith.constant dense<0.000000e+00> : vector<8x8xf32>
      %135 = tpu.matmul %132, %133, %cst_77 {dimension_numbers = #tpu.dot_dimension_numbers<[1], [1], [0], [0], [0, 0, 1, 0], [], []>} : vector<8x8xbf16>, vector<8x8xbf16>, vector<8x8xf32> -> vector<8x8xf32>
      %cst_78 = arith.constant 0xFF800000 : f32
      %136 = vector.broadcast %cst_78 : f32 to vector<8x8xf32>
      %137 = arith.select %26, %135, %136 : vector<8x8xi1>, vector<8x8xf32>
      %c3 = arith.constant 3 : index
      %c0_79 = arith.constant 0 : index
      %c0_80 = arith.constant 0 : index
      %138 = vector.load %arg11[%c3, %c0_79, %c0_80] : memref<4x8x1xf32, #tpu.memory_space<vmem>>, vector<1x8x1xf32>
      %139 = vector.shape_cast %138 : vector<1x8x1xf32> to vector<8x1xf32>
      %cst_81 = arith.constant dense<0xFF800000> : vector<8xf32>
      %140 = vector.multi_reduction <maximumf>, %137, %cst_81 [1] : vector<8x8xf32> to vector<8xf32>
      %141 = vector.shape_cast %140 : vector<8xf32> to vector<8x1xf32>
      %142 = arith.maximumf %139, %141 : vector<8x1xf32>
      %143 = arith.subf %139, %142 : vector<8x1xf32>
      %144 = math.exp %143 : vector<8x1xf32>
      %145 = vector.broadcast %142 : vector<8x1xf32> to vector<8x8xf32>
      %146 = arith.subf %137, %145 : vector<8x8xf32>
      %147 = math.exp %146 : vector<8x8xf32>
      %c3_82 = arith.constant 3 : index
      %c0_83 = arith.constant 0 : index
      %c0_84 = arith.constant 0 : index
      %148 = vector.load %arg12[%c3_82, %c0_83, %c0_84] : memref<4x8x1xf32, #tpu.memory_space<vmem>>, vector<1x8x1xf32>
      %149 = vector.shape_cast %148 : vector<1x8x1xf32> to vector<8x1xf32>
      %150 = arith.mulf %144, %149 : vector<8x1xf32>
      %cst_85 = arith.constant dense<0.000000e+00> : vector<8xf32>
      %151 = vector.multi_reduction <add>, %147, %cst_85 [1] : vector<8x8xf32> to vector<8xf32>
      %152 = vector.shape_cast %151 : vector<8xf32> to vector<8x1xf32>
      %153 = arith.addf %150, %152 : vector<8x1xf32>
      %c3_86 = arith.constant 3 : index
      %c0_87 = arith.constant 0 : index
      %c0_88 = arith.constant 0 : index
      %154 = vector.load %arg12[%c3_86, %c0_87, %c0_88] : memref<4x8x1xf32, #tpu.memory_space<vmem>>, vector<1x8x1xf32>
      %155 = vector.shape_cast %154 : vector<1x8x1xf32> to vector<8x1xf32>
      %156 = vector.shape_cast %153 : vector<8x1xf32> to vector<1x8x1xf32>
      tpu.vector_store %arg12[%c3_86, %c0_87, %c0_88], %156 {strides = array<i32>} : memref<4x8x1xf32, #tpu.memory_space<vmem>>, vector<1x8x1xf32>,
      %c0_89 = arith.constant 0 : index
      %c24_90 = arith.constant 24 : index
      %157 = vector.load %arg13[%c0_89, %c24_90] : memref<8x32xf32, #tpu.memory_space<vmem>>, vector<8x8xf32>
      %158 = vector.broadcast %144 : vector<8x1xf32> to vector<8x8xf32>
      %159 = arith.mulf %158, %157 : vector<8x8xf32>
      %160 = arith.truncf %147 : vector<8x8xf32> to vector<8x8xbf16>
      %cst_91 = arith.constant dense<0.000000e+00> : vector<8x8xf32>
      %161 = tpu.matmul %160, %134, %cst_91 {dimension_numbers = #tpu.dot_dimension_numbers<[1], [0], [0], [1], [0, 0, 1, 1], [], []>} : vector<8x8xbf16>, vector<8x8xbf16>, vector<8x8xf32> -> vector<8x8xf32>
      %162 = arith.addf %159, %161 : vector<8x8xf32>
      %c0_92 = arith.constant 0 : index
      %c24_93 = arith.constant 24 : index
      %163 = vector.load %arg13[%c0_92, %c24_93] : memref<8x32xf32, #tpu.memory_space<vmem>>, vector<8x8xf32>
      tpu.vector_store %arg13[%c0_92, %c24_93], %162 {strides = array<i32>} : memref<8x32xf32, #tpu.memory_space<vmem>>, vector<8x8xf32>,
      %c3_94 = arith.constant 3 : index
      %c0_95 = arith.constant 0 : index
      %c0_96 = arith.constant 0 : index
      %164 = vector.load %arg11[%c3_94, %c0_95, %c0_96] : memref<4x8x1xf32, #tpu.memory_space<vmem>>, vector<1x8x1xf32>
      %165 = vector.shape_cast %164 : vector<1x8x1xf32> to vector<8x1xf32>
      %166 = vector.shape_cast %142 : vector<8x1xf32> to vector<1x8x1xf32>
      tpu.vector_store %arg11[%c3_94, %c0_95, %c0_96], %166 {strides = array<i32>} : memref<4x8x1xf32, #tpu.memory_space<vmem>>, vector<1x8x1xf32>,
    } else {
    }
    %c0_i32_3 = arith.constant 0 : i32
    %9 = arith.cmpi eq, %arg2, %c0_i32_3 : i32
    %10 = arith.extui %9 : i1 to i32
    %c0_i32_4 = arith.constant 0 : i32
    %11 = arith.cmpi ne, %10, %c0_i32_4 : i32
    scf.if %11 {
      %c0 = arith.constant 0 : index
      %c0_5 = arith.constant 0 : index
      %12 = vector.load %arg13[%c0, %c0_5] : memref<8x32xf32, #tpu.memory_space<vmem>>, vector<8x8xf32>
      %c0_6 = arith.constant 0 : index
      %c0_7 = arith.constant 0 : index
      %c0_8 = arith.constant 0 : index
      %13 = vector.load %arg12[%c0_6, %c0_7, %c0_8] : memref<4x8x1xf32, #tpu.memory_space<vmem>>, vector<1x8x1xf32>
      %14 = vector.shape_cast %13 : vector<1x8x1xf32> to vector<8x1xf32>
      %15 = tpu.reciprocal %14 {approx = true} : vector<8x1xf32> -> vector<8x1xf32>
      %16 = vector.broadcast %15 : vector<8x1xf32> to vector<8x8xf32>
      %17 = arith.mulf %12, %16 : vector<8x8xf32>
      %c0_9 = arith.constant 0 : index
      %c0_10 = arith.constant 0 : index
      %18 = vector.load %arg13[%c0_9, %c0_10] : memref<8x32xf32, #tpu.memory_space<vmem>>, vector<8x8xf32>
      tpu.vector_store %arg13[%c0_9, %c0_10], %17 {strides = array<i32>} : memref<8x32xf32, #tpu.memory_space<vmem>>, vector<8x8xf32>,
      %c0_11 = arith.constant 0 : index
      %c8 = arith.constant 8 : index
      %19 = vector.load %arg13[%c0_11, %c8] : memref<8x32xf32, #tpu.memory_space<vmem>>, vector<8x8xf32>
      %c1 = arith.constant 1 : index
      %c0_12 = arith.constant 0 : index
      %c0_13 = arith.constant 0 : index
      %20 = vector.load %arg12[%c1, %c0_12, %c0_13] : memref<4x8x1xf32, #tpu.memory_space<vmem>>, vector<1x8x1xf32>
      %21 = vector.shape_cast %20 : vector<1x8x1xf32> to vector<8x1xf32>
      %22 = tpu.reciprocal %21 {approx = true} : vector<8x1xf32> -> vector<8x1xf32>
      %23 = vector.broadcast %22 : vector<8x1xf32> to vector<8x8xf32>
      %24 = arith.mulf %19, %23 : vector<8x8xf32>
      %c0_14 = arith.constant 0 : index
      %c8_15 = arith.constant 8 : index
      %25 = vector.load %arg13[%c0_14, %c8_15] : memref<8x32xf32, #tpu.memory_space<vmem>>, vector<8x8xf32>
      tpu.vector_store %arg13[%c0_14, %c8_15], %24 {strides = array<i32>} : memref<8x32xf32, #tpu.memory_space<vmem>>, vector<8x8xf32>,
      %c0_16 = arith.constant 0 : index
      %c16 = arith.constant 16 : index
      %26 = vector.load %arg13[%c0_16, %c16] : memref<8x32xf32, #tpu.memory_space<vmem>>, vector<8x8xf32>
      %c2 = arith.constant 2 : index
      %c0_17 = arith.constant 0 : index
      %c0_18 = arith.constant 0 : index
      %27 = vector.load %arg12[%c2, %c0_17, %c0_18] : memref<4x8x1xf32, #tpu.memory_space<vmem>>, vector<1x8x1xf32>
      %28 = vector.shape_cast %27 : vector<1x8x1xf32> to vector<8x1xf32>
      %29 = tpu.reciprocal %28 {approx = true} : vector<8x1xf32> -> vector<8x1xf32>
      %30 = vector.broadcast %29 : vector<8x1xf32> to vector<8x8xf32>
      %31 = arith.mulf %26, %30 : vector<8x8xf32>
      %c0_19 = arith.constant 0 : index
      %c16_20 = arith.constant 16 : index
      %32 = vector.load %arg13[%c0_19, %c16_20] : memref<8x32xf32, #tpu.memory_space<vmem>>, vector<8x8xf32>
      tpu.vector_store %arg13[%c0_19, %c16_20], %31 {strides = array<i32>} : memref<8x32xf32, #tpu.memory_space<vmem>>, vector<8x8xf32>,
      %c0_21 = arith.constant 0 : index
      %c24 = arith.constant 24 : index
      %33 = vector.load %arg13[%c0_21, %c24] : memref<8x32xf32, #tpu.memory_space<vmem>>, vector<8x8xf32>
      %c3 = arith.constant 3 : index
      %c0_22 = arith.constant 0 : index
      %c0_23 = arith.constant 0 : index
      %34 = vector.load %arg12[%c3, %c0_22, %c0_23] : memref<4x8x1xf32, #tpu.memory_space<vmem>>, vector<1x8x1xf32>
      %35 = vector.shape_cast %34 : vector<1x8x1xf32> to vector<8x1xf32>
      %36 = tpu.reciprocal %35 {approx = true} : vector<8x1xf32> -> vector<8x1xf32>
      %37 = vector.broadcast %36 : vector<8x1xf32> to vector<8x8xf32>
      %38 = arith.mulf %33, %37 : vector<8x8xf32>
      %c0_24 = arith.constant 0 : index
      %c24_25 = arith.constant 24 : index
      %39 = vector.load %arg13[%c0_24, %c24_25] : memref<8x32xf32, #tpu.memory_space<vmem>>, vector<8x8xf32>
      tpu.vector_store %arg13[%c0_24, %c24_25], %38 {strides = array<i32>} : memref<8x32xf32, #tpu.memory_space<vmem>>, vector<8x8xf32>,
      %c0_26 = arith.constant 0 : index
      %c0_27 = arith.constant 0 : index
      %40 = vector.load %arg13[%c0_26, %c0_27] : memref<8x32xf32, #tpu.memory_space<vmem>>, vector<8x32xf32>
      %41 = arith.truncf %40 : vector<8x32xf32> to vector<8x32xbf16>
      %c0_28 = arith.constant 0 : index
      %c0_29 = arith.constant 0 : index
      %42 = vector.load %arg7[%c0_28, %c0_29] : memref<32x32xbf16, #tpu.memory_space<vmem>>, vector<32x32xbf16>
      %cst = arith.constant dense<0.000000e+00> : vector<8x32xf32>
      %43 = tpu.matmul %41, %42, %cst {dimension_numbers = #tpu.dot_dimension_numbers<[1], [0], [0], [1], [0, 0, 1, 1], [], []>} : vector<8x32xbf16>, vector<32x32xbf16>, vector<8x32xf32> -> vector<8x32xf32>
      %c0_30 = arith.constant 0 : index
      %c0_31 = arith.constant 0 : index
      %44 = vector.load %arg8[%c0_30, %c0_31] : memref<1x32xf32, #tpu.memory_space<vmem>>, vector<1x32xf32>
      %45 = vector.broadcast %44 : vector<1x32xf32> to vector<8x32xf32>
      %46 = arith.addf %43, %45 : vector<8x32xf32>
      %c0_32 = arith.constant 0 : index
      %c0_33 = arith.constant 0 : index
      %c0_34 = arith.constant 0 : index
      %47 = vector.load %arg9[%c0_32, %c0_33, %c0_34] : memref<1x8x32xf32, #tpu.memory_space<vmem>>, vector<1x8x32xf32>
      %48 = vector.shape_cast %47 : vector<1x8x32xf32> to vector<8x32xf32>
      %49 = vector.shape_cast %46 : vector<8x32xf32> to vector<1x8x32xf32>
      tpu.vector_store %arg9[%c0_32, %c0_33, %c0_34], %49 {strides = array<i32>} : memref<1x8x32xf32, #tpu.memory_space<vmem>>, vector<1x8x32xf32>,
    } else {
    }
    return
  }
  func.func @transform_0(%arg0: i32, %arg1: i32, %arg2: i32) -> (i32, i32, i32) {
    %c0_i32 = arith.constant 0 : i32
    %c0_i32_0 = arith.constant 0 : i32
    return %arg0, %arg1, %c0_i32 : i32, i32, i32
  }
  func.func @transform_1(%arg0: i32, %arg1: i32, %arg2: i32) -> (i32, i32, i32) {
    %c0_i32 = arith.constant 0 : i32
    %c0_i32_0 = arith.constant 0 : i32
    return %arg0, %arg2, %c0_i32 : i32, i32, i32
  }
  func.func @transform_2(%arg0: i32, %arg1: i32, %arg2: i32) -> (i32, i32) {
    %c0_i32 = arith.constant 0 : i32
    %c0_i32_0 = arith.constant 0 : i32
    %c0_i32_1 = arith.constant 0 : i32
    return %c0_i32, %c0_i32_0 : i32, i32
  }
  func.func @transform_3(%arg0: i32, %arg1: i32, %arg2: i32) -> (i32, i32) {
    %c0_i32 = arith.constant 0 : i32
    %c0_i32_0 = arith.constant 0 : i32
    %c0_i32_1 = arith.constant 0 : i32
    return %c0_i32, %c0_i32_0 : i32, i32
  }
  func.func @transform_4(%arg0: i32, %arg1: i32, %arg2: i32) -> (i32, i32) {
    %c0_i32 = arith.constant 0 : i32
    %c0_i32_0 = arith.constant 0 : i32
    %c0_i32_1 = arith.constant 0 : i32
    return %c0_i32, %c0_i32_0 : i32, i32
  }
  func.func @transform_5(%arg0: i32, %arg1: i32, %arg2: i32) -> (i32, i32) {
    %c0_i32 = arith.constant 0 : i32
    %c0_i32_0 = arith.constant 0 : i32
    %c0_i32_1 = arith.constant 0 : i32
    return %c0_i32, %c0_i32_0 : i32, i32
  }
  func.func @transform_6(%arg0: i32, %arg1: i32, %arg2: i32) -> (i32, i32, i32) {
    %c0_i32 = arith.constant 0 : i32
    %c0_i32_0 = arith.constant 0 : i32
    return %arg0, %arg1, %c0_i32 : i32, i32, i32
  }
}

module attributes {stable_mosaic.version = 11 : i64} {
  func.func @mha_flash_kernel(%arg0: i32, %arg1: i32, %arg2: i32, %arg3: memref<1x8x32xf32, #tpu.memory_space<vmem>>, %arg4: memref<1x8x32xf32, #tpu.memory_space<vmem>>, %arg5: memref<32x32xbf16, #tpu.memory_space<vmem>>, %arg6: memref<32x64xbf16, #tpu.memory_space<vmem>>, %arg7: memref<32x32xbf16, #tpu.memory_space<vmem>>, %arg8: memref<1x32xf32, #tpu.memory_space<vmem>>, %arg9: memref<1x8x32xf32, #tpu.memory_space<vmem>>, %arg10: memref<8x32xbf16, #tpu.memory_space<vmem>>, %arg11: memref<4x8x1xf32, #tpu.memory_space<vmem>>, %arg12: memref<4x8x1xf32, #tpu.memory_space<vmem>>, %arg13: memref<8x32xf32, #tpu.memory_space<vmem>>) attributes {dimension_semantics = [#tpu.dimension_semantics<parallel>, #tpu.dimension_semantics<parallel>, #tpu.dimension_semantics<arbitrary>], iteration_bounds = array<i64: 2, 1, 1>, scalar_prefetch = 0 : i64, scratch_operands = 4 : i64, tpu.core_type = #tpu.core_type<tc>, window_params = [{transform_indices = @transform_0, window_bounds = array<i64: 1, 8, 32>}, {transform_indices = @transform_1, window_bounds = array<i64: 1, 8, 32>}, {pipeline_mode = #tpu.pipeline_mode<synchronous>, transform_indices = @transform_2, window_bounds = array<i64: 32, 32>}, {pipeline_mode = #tpu.pipeline_mode<synchronous>, transform_indices = @transform_3, window_bounds = array<i64: 32, 64>}, {pipeline_mode = #tpu.pipeline_mode<synchronous>, transform_indices = @transform_4, window_bounds = array<i64: 32, 32>}, {pipeline_mode = #tpu.pipeline_mode<synchronous>, transform_indices = @transform_5, window_bounds = array<i64: 1, 32>}, {transform_indices = @transform_6, window_bounds = array<i64: 1, 8, 32>}]} {
    %c0_i32 = arith.constant 0 : i32
    %0 = arith.cmpi eq, %arg2, %c0_i32 : i32
    %1 = arith.extui %0 : i1 to i32
    %c0_i32_0 = arith.constant 0 : i32
    %2 = arith.cmpi ne, %1, %c0_i32_0 : i32
    scf.if %2 {
      %c0 = arith.constant 0 : index
      %c0_5 = arith.constant 0 : index
      %c0_6 = arith.constant 0 : index
      %12 = vector.load %arg3[%c0, %c0_5, %c0_6] : memref<1x8x32xf32, #tpu.memory_space<vmem>>, vector<1x8x32xf32>
      %13 = vector.shape_cast %12 : vector<1x8x32xf32> to vector<8x32xf32>
      %14 = arith.truncf %13 : vector<8x32xf32> to vector<8x32xbf16>
      %c0_7 = arith.constant 0 : index
      %c0_8 = arith.constant 0 : index
      %15 = vector.load %arg5[%c0_7, %c0_8] : memref<32x32xbf16, #tpu.memory_space<vmem>>, vector<32x32xbf16>
      %cst = arith.constant dense<0.000000e+00> : vector<8x32xf32>
      %16 = tpu.matmul %14, %15, %cst {dimension_numbers = #tpu.dot_dimension_numbers<[1], [0], [0], [1], [0, 0, 1, 1], [], []>} : vector<8x32xbf16>, vector<32x32xbf16>, vector<8x32xf32> -> vector<8x32xf32>
      %17 = arith.truncf %16 : vector<8x32xf32> to vector<8x32xbf16>
      %c0_9 = arith.constant 0 : index
      %c0_10 = arith.constant 0 : index
      %18 = vector.load %arg10[%c0_9, %c0_10] : memref<8x32xbf16, #tpu.memory_space<vmem>>, vector<8x32xbf16>
      tpu.vector_store %arg10[%c0_9, %c0_10], %17 {strides = array<i32>} : memref<8x32xbf16, #tpu.memory_space<vmem>>, vector<8x32xbf16>,
      %cst_11 = arith.constant 0xFF800000 : f32
      %19 = vector.broadcast %cst_11 : f32 to vector<4x8x1xf32>
      %c0_12 = arith.constant 0 : index
      %c0_13 = arith.constant 0 : index
      %c0_14 = arith.constant 0 : index
      %20 = vector.load %arg11[%c0_12, %c0_13, %c0_14] : memref<4x8x1xf32, #tpu.memory_space<vmem>>, vector<4x8x1xf32>
      tpu.vector_store %arg11[%c0_12, %c0_13, %c0_14], %19 {strides = array<i32>} : memref<4x8x1xf32, #tpu.memory_space<vmem>>, vector<4x8x1xf32>,
      %cst_15 = arith.constant 0.000000e+00 : f32
      %21 = vector.broadcast %cst_15 : f32 to vector<4x8x1xf32>
      %c0_16 = arith.constant 0 : index
      %c0_17 = arith.constant 0 : index
      %c0_18 = arith.constant 0 : index
      %22 = vector.load %arg12[%c0_16, %c0_17, %c0_18] : memref<4x8x1xf32, #tpu.memory_space<vmem>>, vector<4x8x1xf32>
      tpu.vector_store %arg12[%c0_16, %c0_17, %c0_18], %21 {strides = array<i32>} : memref<4x8x1xf32, #tpu.memory_space<vmem>>, vector<4x8x1xf32>,
      %cst_19 = arith.constant 0.000000e+00 : f32
      %23 = vector.broadcast %cst_19 : f32 to vector<8x32xf32>
      %c0_20 = arith.constant 0 : index
      %c0_21 = arith.constant 0 : index
      %24 = vector.load %arg13[%c0_20, %c0_21] : memref<8x32xf32, #tpu.memory_space<vmem>>, vector<8x32xf32>
      tpu.vector_store %arg13[%c0_20, %c0_21], %23 {strides = array<i32>} : memref<8x32xf32, #tpu.memory_space<vmem>>, vector<8x32xf32>,
    } else {
    }
    %c8_i32 = arith.constant 8 : i32
    %3 = arith.muli %arg2, %c8_i32 : i32
    %c8_i32_1 = arith.constant 8 : i32
    %4 = arith.muli %arg1, %c8_i32_1 : i32
    %c7_i32 = arith.constant 7 : i32
    %5 = arith.addi %4, %c7_i32 : i32
    %6 = arith.cmpi sle, %3, %5 : i32
    %7 = arith.extui %6 : i1 to i32
    %c0_i32_2 = arith.constant 0 : i32
    %8 = arith.cmpi ne, %7, %c0_i32_2 : i32
    scf.if %8 {
      %c0 = arith.constant 0 : index
      %c0_5 = arith.constant 0 : index
      %c0_6 = arith.constant 0 : index
      %12 = vector.load %arg4[%c0, %c0_5, %c0_6] : memref<1x8x32xf32, #tpu.memory_space<vmem>>, vector<1x8x32xf32>
      %13 = vector.shape_cast %12 : vector<1x8x32xf32> to vector<8x32xf32>
      %14 = arith.truncf %13 : vector<8x32xf32> to vector<8x32xbf16>
      %c0_7 = arith.constant 0 : index
      %c0_8 = arith.constant 0 : index
      %15 = vector.load %arg6[%c0_7, %c0_8] : memref<32x64xbf16, #tpu.memory_space<vmem>>, vector<32x64xbf16>
      %cst = arith.constant dense<0.000000e+00> : vector<8x64xf32>
      %16 = tpu.matmul %14, %15, %cst {dimension_numbers = #tpu.dot_dimension_numbers<[1], [0], [0], [1], [0, 0, 1, 1], [], []>} : vector<8x32xbf16>, vector<32x64xbf16>, vector<8x64xf32> -> vector<8x64xf32>
      %17 = arith.truncf %16 : vector<8x64xf32> to vector<8x64xbf16>
      %c8_i32_9 = arith.constant 8 : i32
      %18 = arith.muli %arg1, %c8_i32_9 : i32
      %19 = tpu.iota {dimensions = array<i32: 0>} : vector<8x8xi32>
      %20 = vector.broadcast %18 : i32 to vector<8x8xi32>
      %21 = arith.addi %20, %19 : vector<8x8xi32>
      %c8_i32_10 = arith.constant 8 : i32
      %22 = arith.muli %arg2, %c8_i32_10 : i32
      %23 = tpu.iota {dimensions = array<i32: 1>} : vector<8x8xi32>
      %24 = vector.broadcast %22 : i32 to vector<8x8xi32>
      %25 = arith.addi %24, %23 : vector<8x8xi32>
      %26 = arith.cmpi sge, %21, %25 : vector<8x8xi32>
      %c0_11 = arith.constant 0 : index
      %c0_12 = arith.constant 0 : index
      %27 = vector.load %arg10[%c0_11, %c0_12] : memref<8x32xbf16, #tpu.memory_space<vmem>>, vector<8x8xbf16>
      %28 = vector.extract_strided_slice %17 {offsets = [0, 0], sizes = [8, 8], strides = [1, 1]} : vector<8x64xbf16> to vector<8x8xbf16>
      %29 = vector.extract_strided_slice %17 {offsets = [0, 32], sizes = [8, 8], strides = [1, 1]} : vector<8x64xbf16> to vector<8x8xbf16>
      %cst_13 = arith.constant dense<0.000000e+00> : vector<8x8xf32>
      %30 = tpu.matmul %27, %28, %cst_13 {dimension_numbers = #tpu.dot_dimension_numbers<[1], [1], [0], [0], [0, 0, 1, 0], [], []>} : vector<8x8xbf16>, vector<8x8xbf16>, vector<8x8xf32> -> vector<8x8xf32>
      %cst_14 = arith.constant 0xFF800000 : f32
      %31 = vector.broadcast %cst_14 : f32 to vector<8x8xf32>
      %32 = arith.select %26, %30, %31 : vector<8x8xi1>, vector<8x8xf32>
      %c0_15 = arith.constant 0 : index
      %c0_16 = arith.constant 0 : index
      %c0_17 = arith.constant 0 : index
      %33 = vector.load %arg11[%c0_15, %c0_16, %c0_17] : memref<4x8x1xf32, #tpu.memory_space<vmem>>, vector<1x8x1xf32>
      %34 = vector.shape_cast %33 : vector<1x8x1xf32> to vector<8x1xf32>
      %cst_18 = arith.constant dense<0xFF800000> : vector<8xf32>
      %35 = vector.multi_reduction <maximumf>, %32, %cst_18 [1] : vector<8x8xf32> to vector<8xf32>
      %36 = vector.shape_cast %35 : vector<8xf32> to vector<8x1xf32>
      %37 = arith.maximumf %34, %36 : vector<8x1xf32>
      %38 = arith.subf %34, %37 : vector<8x1xf32>
      %39 = math.exp %38 : vector<8x1xf32>
      %40 = vector.broadcast %37 : vector<8x1xf32> to vector<8x8xf32>
      %41 = arith.subf %32, %40 : vector<8x8xf32>
      %42 = math.exp %41 : vector<8x8xf32>
      %c0_19 = arith.constant 0 : index
      %c0_20 = arith.constant 0 : index
      %c0_21 = arith.constant 0 : index
      %43 = vector.load %arg12[%c0_19, %c0_20, %c0_21] : memref<4x8x1xf32, #tpu.memory_space<vmem>>, vector<1x8x1xf32>
      %44 = vector.shape_cast %43 : vector<1x8x1xf32> to vector<8x1xf32>
      %45 = arith.mulf %39, %44 : vector<8x1xf32>
      %cst_22 = arith.constant dense<0.000000e+00> : vector<8xf32>
      %46 = vector.multi_reduction <add>, %42, %cst_22 [1] : vector<8x8xf32> to vector<8xf32>
      %47 = vector.shape_cast %46 : vector<8xf32> to vector<8x1xf32>
      %48 = arith.addf %45, %47 : vector<8x1xf32>
      %c0_23 = arith.constant 0 : index
      %c0_24 = arith.constant 0 : index
      %c0_25 = arith.constant 0 : index
      %49 = vector.load %arg12[%c0_23, %c0_24, %c0_25] : memref<4x8x1xf32, #tpu.memory_space<vmem>>, vector<1x8x1xf32>
      %50 = vector.shape_cast %49 : vector<1x8x1xf32> to vector<8x1xf32>
      %51 = vector.shape_cast %48 : vector<8x1xf32> to vector<1x8x1xf32>
      tpu.vector_store %arg12[%c0_23, %c0_24, %c0_25], %51 {strides = array<i32>} : memref<4x8x1xf32, #tpu.memory_space<vmem>>, vector<1x8x1xf32>,
      %c0_26 = arith.constant 0 : index
      %c0_27 = arith.constant 0 : index
      %52 = vector.load %arg13[%c0_26, %c0_27] : memref<8x32xf32, #tpu.memory_space<vmem>>, vector<8x8xf32>
      %53 = vector.broadcast %39 : vector<8x1xf32> to vector<8x8xf32>
      %54 = arith.mulf %53, %52 : vector<8x8xf32>
      %55 = arith.truncf %42 : vector<8x8xf32> to vector<8x8xbf16>
      %cst_28 = arith.constant dense<0.000000e+00> : vector<8x8xf32>
      %56 = tpu.matmul %55, %29, %cst_28 {dimension_numbers = #tpu.dot_dimension_numbers<[1], [0], [0], [1], [0, 0, 1, 1], [], []>} : vector<8x8xbf16>, vector<8x8xbf16>, vector<8x8xf32> -> vector<8x8xf32>
      %57 = arith.addf %54, %56 : vector<8x8xf32>
      %c0_29 = arith.constant 0 : index
      %c0_30 = arith.constant 0 : index
      %58 = vector.load %arg13[%c0_29, %c0_30] : memref<8x32xf32, #tpu.memory_space<vmem>>, vector<8x8xf32>
      tpu.vector_store %arg13[%c0_29, %c0_30], %57 {strides = array<i32>} : memref<8x32xf32, #tpu.memory_space<vmem>>, vector<8x8xf32>,
      %c0_31 = arith.constant 0 : index
      %c0_32 = arith.constant 0 : index
      %c0_33 = arith.constant 0 : index
      %59 = vector.load %arg11[%c0_31, %c0_32, %c0_33] : memref<4x8x1xf32, #tpu.memory_space<vmem>>, vector<1x8x1xf32>
      %60 = vector.shape_cast %59 : vector<1x8x1xf32> to vector<8x1xf32>
      %61 = vector.shape_cast %37 : vector<8x1xf32> to vector<1x8x1xf32>
      tpu.vector_store %arg11[%c0_31, %c0_32, %c0_33], %61 {strides = array<i32>} : memref<4x8x1xf32, #tpu.memory_space<vmem>>, vector<1x8x1xf32>,
      %c0_34 = arith.constant 0 : index
      %c8 = arith.constant 8 : index
      %62 = vector.load %arg10[%c0_34, %c8] : memref<8x32xbf16, #tpu.memory_space<vmem>>, vector<8x8xbf16>
      %63 = vector.extract_strided_slice %17 {offsets = [0, 8], sizes = [8, 8], strides = [1, 1]} : vector<8x64xbf16> to vector<8x8xbf16>
      %64 = vector.extract_strided_slice %17 {offsets = [0, 40], sizes = [8, 8], strides = [1, 1]} : vector<8x64xbf16> to vector<8x8xbf16>
      %cst_35 = arith.constant dense<0.000000e+00> : vector<8x8xf32>
      %65 = tpu.matmul %62, %63, %cst_35 {dimension_numbers = #tpu.dot_dimension_numbers<[1], [1], [0], [0], [0, 0, 1, 0], [], []>} : vector<8x8xbf16>, vector<8x8xbf16>, vector<8x8xf32> -> vector<8x8xf32>
      %cst_36 = arith.constant 0xFF800000 : f32
      %66 = vector.broadcast %cst_36 : f32 to vector<8x8xf32>
      %67 = arith.select %26, %65, %66 : vector<8x8xi1>, vector<8x8xf32>
      %c1 = arith.constant 1 : index
      %c0_37 = arith.constant 0 : index
      %c0_38 = arith.constant 0 : index
      %68 = vector.load %arg11[%c1, %c0_37, %c0_38] : memref<4x8x1xf32, #tpu.memory_space<vmem>>, vector<1x8x1xf32>
      %69 = vector.shape_cast %68 : vector<1x8x1xf32> to vector<8x1xf32>
      %cst_39 = arith.constant dense<0xFF800000> : vector<8xf32>
      %70 = vector.multi_reduction <maximumf>, %67, %cst_39 [1] : vector<8x8xf32> to vector<8xf32>
      %71 = vector.shape_cast %70 : vector<8xf32> to vector<8x1xf32>
      %72 = arith.maximumf %69, %71 : vector<8x1xf32>
      %73 = arith.subf %69, %72 : vector<8x1xf32>
      %74 = math.exp %73 : vector<8x1xf32>
      %75 = vector.broadcast %72 : vector<8x1xf32> to vector<8x8xf32>
      %76 = arith.subf %67, %75 : vector<8x8xf32>
      %77 = math.exp %76 : vector<8x8xf32>
      %c1_40 = arith.constant 1 : index
      %c0_41 = arith.constant 0 : index
      %c0_42 = arith.constant 0 : index
      %78 = vector.load %arg12[%c1_40, %c0_41, %c0_42] : memref<4x8x1xf32, #tpu.memory_space<vmem>>, vector<1x8x1xf32>
      %79 = vector.shape_cast %78 : vector<1x8x1xf32> to vector<8x1xf32>
      %80 = arith.mulf %74, %79 : vector<8x1xf32>
      %cst_43 = arith.constant dense<0.000000e+00> : vector<8xf32>
      %81 = vector.multi_reduction <add>, %77, %cst_43 [1] : vector<8x8xf32> to vector<8xf32>
      %82 = vector.shape_cast %81 : vector<8xf32> to vector<8x1xf32>
      %83 = arith.addf %80, %82 : vector<8x1xf32>
      %c1_44 = arith.constant 1 : index
      %c0_45 = arith.constant 0 : index
      %c0_46 = arith.constant 0 : index
      %84 = vector.load %arg12[%c1_44, %c0_45, %c0_46] : memref<4x8x1xf32, #tpu.memory_space<vmem>>, vector<1x8x1xf32>
      %85 = vector.shape_cast %84 : vector<1x8x1xf32> to vector<8x1xf32>
      %86 = vector.shape_cast %83 : vector<8x1xf32> to vector<1x8x1xf32>
      tpu.vector_store %arg12[%c1_44, %c0_45, %c0_46], %86 {strides = array<i32>} : memref<4x8x1xf32, #tpu.memory_space<vmem>>, vector<1x8x1xf32>,
      %c0_47 = arith.constant 0 : index
      %c8_48 = arith.constant 8 : index
      %87 = vector.load %arg13[%c0_47, %c8_48] : memref<8x32xf32, #tpu.memory_space<vmem>>, vector<8x8xf32>
      %88 = vector.broadcast %74 : vector<8x1xf32> to vector<8x8xf32>
      %89 = arith.mulf %88, %87 : vector<8x8xf32>
      %90 = arith.truncf %77 : vector<8x8xf32> to vector<8x8xbf16>
      %cst_49 = arith.constant dense<0.000000e+00> : vector<8x8xf32>
      %91 = tpu.matmul %90, %64, %cst_49 {dimension_numbers = #tpu.dot_dimension_numbers<[1], [0], [0], [1], [0, 0, 1, 1], [], []>} : vector<8x8xbf16>, vector<8x8xbf16>, vector<8x8xf32> -> vector<8x8xf32>
      %92 = arith.addf %89, %91 : vector<8x8xf32>
      %c0_50 = arith.constant 0 : index
      %c8_51 = arith.constant 8 : index
      %93 = vector.load %arg13[%c0_50, %c8_51] : memref<8x32xf32, #tpu.memory_space<vmem>>, vector<8x8xf32>
      tpu.vector_store %arg13[%c0_50, %c8_51], %92 {strides = array<i32>} : memref<8x32xf32, #tpu.memory_space<vmem>>, vector<8x8xf32>,
      %c1_52 = arith.constant 1 : index
      %c0_53 = arith.constant 0 : index
      %c0_54 = arith.constant 0 : index
      %94 = vector.load %arg11[%c1_52, %c0_53, %c0_54] : memref<4x8x1xf32, #tpu.memory_space<vmem>>, vector<1x8x1xf32>
      %95 = vector.shape_cast %94 : vector<1x8x1xf32> to vector<8x1xf32>
      %96 = vector.shape_cast %72 : vector<8x1xf32> to vector<1x8x1xf32>
      tpu.vector_store %arg11[%c1_52, %c0_53, %c0_54], %96 {strides = array<i32>} : memref<4x8x1xf32, #tpu.memory_space<vmem>>, vector<1x8x1xf32>,
      %c0_55 = arith.constant 0 : index
      %c16 = arith.constant 16 : index
      %97 = vector.load %arg10[%c0_55, %c16] : memref<8x32xbf16, #tpu.memory_space<vmem>>, vector<8x8xbf16>
      %98 = vector.extract_strided_slice %17 {offsets = [0, 16], sizes = [8, 8], strides = [1, 1]} : vector<8x64xbf16> to vector<8x8xbf16>
      %99 = vector.extract_strided_slice %17 {offsets = [0, 48], sizes = [8, 8], strides = [1, 1]} : vector<8x64xbf16> to vector<8x8xbf16>
      %cst_56 = arith.constant dense<0.000000e+00> : vector<8x8xf32>
      %100 = tpu.matmul %97, %98, %cst_56 {dimension_numbers = #tpu.dot_dimension_numbers<[1], [1], [0], [0], [0, 0, 1, 0], [], []>} : vector<8x8xbf16>, vector<8x8xbf16>, vector<8x8xf32> -> vector<8x8xf32>
      %cst_57 = arith.constant 0xFF800000 : f32
      %101 = vector.broadcast %cst_57 : f32 to vector<8x8xf32>
      %102 = arith.select %26, %100, %101 : vector<8x8xi1>, vector<8x8xf32>
      %c2 = arith.constant 2 : index
      %c0_58 = arith.constant 0 : index
      %c0_59 = arith.constant 0 : index
      %103 = vector.load %arg11[%c2, %c0_58, %c0_59] : memref<4x8x1xf32, #tpu.memory_space<vmem>>, vector<1x8x1xf32>
      %104 = vector.shape_cast %103 : vector<1x8x1xf32> to vector<8x1xf32>
      %cst_60 = arith.constant dense<0xFF800000> : vector<8xf32>
      %105 = vector.multi_reduction <maximumf>, %102, %cst_60 [1] : vector<8x8xf32> to vector<8xf32>
      %106 = vector.shape_cast %105 : vector<8xf32> to vector<8x1xf32>
      %107 = arith.maximumf %104, %106 : vector<8x1xf32>
      %108 = arith.subf %104, %107 : vector<8x1xf32>
      %109 = math.exp %108 : vector<8x1xf32>
      %110 = vector.broadcast %107 : vector<8x1xf32> to vector<8x8xf32>
      %111 = arith.subf %102, %110 : vector<8x8xf32>
      %112 = math.exp %111 : vector<8x8xf32>
      %c2_61 = arith.constant 2 : index
      %c0_62 = arith.constant 0 : index
      %c0_63 = arith.constant 0 : index
      %113 = vector.load %arg12[%c2_61, %c0_62, %c0_63] : memref<4x8x1xf32, #tpu.memory_space<vmem>>, vector<1x8x1xf32>
      %114 = vector.shape_cast %113 : vector<1x8x1xf32> to vector<8x1xf32>
      %115 = arith.mulf %109, %114 : vector<8x1xf32>
      %cst_64 = arith.constant dense<0.000000e+00> : vector<8xf32>
      %116 = vector.multi_reduction <add>, %112, %cst_64 [1] : vector<8x8xf32> to vector<8xf32>
      %117 = vector.shape_cast %116 : vector<8xf32> to vector<8x1xf32>
      %118 = arith.addf %115, %117 : vector<8x1xf32>
      %c2_65 = arith.constant 2 : index
      %c0_66 = arith.constant 0 : index
      %c0_67 = arith.constant 0 : index
      %119 = vector.load %arg12[%c2_65, %c0_66, %c0_67] : memref<4x8x1xf32, #tpu.memory_space<vmem>>, vector<1x8x1xf32>
      %120 = vector.shape_cast %119 : vector<1x8x1xf32> to vector<8x1xf32>
      %121 = vector.shape_cast %118 : vector<8x1xf32> to vector<1x8x1xf32>
      tpu.vector_store %arg12[%c2_65, %c0_66, %c0_67], %121 {strides = array<i32>} : memref<4x8x1xf32, #tpu.memory_space<vmem>>, vector<1x8x1xf32>,
      %c0_68 = arith.constant 0 : index
      %c16_69 = arith.constant 16 : index
      %122 = vector.load %arg13[%c0_68, %c16_69] : memref<8x32xf32, #tpu.memory_space<vmem>>, vector<8x8xf32>
      %123 = vector.broadcast %109 : vector<8x1xf32> to vector<8x8xf32>
      %124 = arith.mulf %123, %122 : vector<8x8xf32>
      %125 = arith.truncf %112 : vector<8x8xf32> to vector<8x8xbf16>
      %cst_70 = arith.constant dense<0.000000e+00> : vector<8x8xf32>
      %126 = tpu.matmul %125, %99, %cst_70 {dimension_numbers = #tpu.dot_dimension_numbers<[1], [0], [0], [1], [0, 0, 1, 1], [], []>} : vector<8x8xbf16>, vector<8x8xbf16>, vector<8x8xf32> -> vector<8x8xf32>
      %127 = arith.addf %124, %126 : vector<8x8xf32>
      %c0_71 = arith.constant 0 : index
      %c16_72 = arith.constant 16 : index
      %128 = vector.load %arg13[%c0_71, %c16_72] : memref<8x32xf32, #tpu.memory_space<vmem>>, vector<8x8xf32>
      tpu.vector_store %arg13[%c0_71, %c16_72], %127 {strides = array<i32>} : memref<8x32xf32, #tpu.memory_space<vmem>>, vector<8x8xf32>,
      %c2_73 = arith.constant 2 : index
      %c0_74 = arith.constant 0 : index
      %c0_75 = arith.constant 0 : index
      %129 = vector.load %arg11[%c2_73, %c0_74, %c0_75] : memref<4x8x1xf32, #tpu.memory_space<vmem>>, vector<1x8x1xf32>
      %130 = vector.shape_cast %129 : vector<1x8x1xf32> to vector<8x1xf32>
      %131 = vector.shape_cast %107 : vector<8x1xf32> to vector<1x8x1xf32>
      tpu.vector_store %arg11[%c2_73, %c0_74, %c0_75], %131 {strides = array<i32>} : memref<4x8x1xf32, #tpu.memory_space<vmem>>, vector<1x8x1xf32>,
      %c0_76 = arith.constant 0 : index
      %c24 = arith.constant 24 : index
      %132 = vector.load %arg10[%c0_76, %c24] : memref<8x32xbf16, #tpu.memory_space<vmem>>, vector<8x8xbf16>
      %133 = vector.extract_strided_slice %17 {offsets = [0, 24], sizes = [8, 8], strides = [1, 1]} : vector<8x64xbf16> to vector<8x8xbf16>
      %134 = vector.extract_strided_slice %17 {offsets = [0, 56], sizes = [8, 8], strides = [1, 1]} : vector<8x64xbf16> to vector<8x8xbf16>
      %cst_77 = arith.constant dense<0.000000e+00> : vector<8x8xf32>
      %135 = tpu.matmul %132, %133, %cst_77 {dimension_numbers = #tpu.dot_dimension_numbers<[1], [1], [0], [0], [0, 0, 1, 0], [], []>} : vector<8x8xbf16>, vector<8x8xbf16>, vector<8x8xf32> -> vector<8x8xf32>
      %cst_78 = arith.constant 0xFF800000 : f32
      %136 = vector.broadcast %cst_78 : f32 to vector<8x8xf32>
      %137 = arith.select %26, %135, %136 : vector<8x8xi1>, vector<8x8xf32>
      %c3 = arith.constant 3 : index
      %c0_79 = arith.constant 0 : index
      %c0_80 = arith.constant 0 : index
      %138 = vector.load %arg11[%c3, %c0_79, %c0_80] : memref<4x8x1xf32, #tpu.memory_space<vmem>>, vector<1x8x1xf32>
      %139 = vector.shape_cast %138 : vector<1x8x1xf32> to vector<8x1xf32>
      %cst_81 = arith.constant dense<0xFF800000> : vector<8xf32>
      %140 = vector.multi_reduction <maximumf>, %137, %cst_81 [1] : vector<8x8xf32> to vector<8xf32>
      %141 = vector.shape_cast %140 : vector<8xf32> to vector<8x1xf32>
      %142 = arith.maximumf %139, %141 : vector<8x1xf32>
      %143 = arith.subf %139, %142 : vector<8x1xf32>
      %144 = math.exp %143 : vector<8x1xf32>
      %145 = vector.broadcast %142 : vector<8x1xf32> to vector<8x8xf32>
      %146 = arith.subf %137, %145 : vector<8x8xf32>
      %147 = math.exp %146 : vector<8x8xf32>
      %c3_82 = arith.constant 3 : index
      %c0_83 = arith.constant 0 : index
      %c0_84 = arith.constant 0 : index
      %148 = vector.load %arg12[%c3_82, %c0_83, %c0_84] : memref<4x8x1xf32, #tpu.memory_space<vmem>>, vector<1x8x1xf32>
      %149 = vector.shape_cast %148 : vector<1x8x1xf32> to vector<8x1xf32>
      %150 = arith.mulf %144, %149 : vector<8x1xf32>
      %cst_85 = arith.constant dense<0.000000e+00> : vector<8xf32>
      %151 = vector.multi_reduction <add>, %147, %cst_85 [1] : vector<8x8xf32> to vector<8xf32>
      %152 = vector.shape_cast %151 : vector<8xf32> to vector<8x1xf32>
      %153 = arith.addf %150, %152 : vector<8x1xf32>
      %c3_86 = arith.constant 3 : index
      %c0_87 = arith.constant 0 : index
      %c0_88 = arith.constant 0 : index
      %154 = vector.load %arg12[%c3_86, %c0_87, %c0_88] : memref<4x8x1xf32, #tpu.memory_space<vmem>>, vector<1x8x1xf32>
      %155 = vector.shape_cast %154 : vector<1x8x1xf32> to vector<8x1xf32>
      %156 = vector.shape_cast %153 : vector<8x1xf32> to vector<1x8x1xf32>
      tpu.vector_store %arg12[%c3_86, %c0_87, %c0_88], %156 {strides = array<i32>} : memref<4x8x1xf32, #tpu.memory_space<vmem>>, vector<1x8x1xf32>,
      %c0_89 = arith.constant 0 : index
      %c24_90 = arith.constant 24 : index
      %157 = vector.load %arg13[%c0_89, %c24_90] : memref<8x32xf32, #tpu.memory_space<vmem>>, vector<8x8xf32>
      %158 = vector.broadcast %144 : vector<8x1xf32> to vector<8x8xf32>
      %159 = arith.mulf %158, %157 : vector<8x8xf32>
      %160 = arith.truncf %147 : vector<8x8xf32> to vector<8x8xbf16>
      %cst_91 = arith.constant dense<0.000000e+00> : vector<8x8xf32>
      %161 = tpu.matmul %160, %134, %cst_91 {dimension_numbers = #tpu.dot_dimension_numbers<[1], [0], [0], [1], [0, 0, 1, 1], [], []>} : vector<8x8xbf16>, vector<8x8xbf16>, vector<8x8xf32> -> vector<8x8xf32>
      %162 = arith.addf %159, %161 : vector<8x8xf32>
      %c0_92 = arith.constant 0 : index
      %c24_93 = arith.constant 24 : index
      %163 = vector.load %arg13[%c0_92, %c24_93] : memref<8x32xf32, #tpu.memory_space<vmem>>, vector<8x8xf32>
      tpu.vector_store %arg13[%c0_92, %c24_93], %162 {strides = array<i32>} : memref<8x32xf32, #tpu.memory_space<vmem>>, vector<8x8xf32>,
      %c3_94 = arith.constant 3 : index
      %c0_95 = arith.constant 0 : index
      %c0_96 = arith.constant 0 : index
      %164 = vector.load %arg11[%c3_94, %c0_95, %c0_96] : memref<4x8x1xf32, #tpu.memory_space<vmem>>, vector<1x8x1xf32>
      %165 = vector.shape_cast %164 : vector<1x8x1xf32> to vector<8x1xf32>
      %166 = vector.shape_cast %142 : vector<8x1xf32> to vector<1x8x1xf32>
      tpu.vector_store %arg11[%c3_94, %c0_95, %c0_96], %166 {strides = array<i32>} : memref<4x8x1xf32, #tpu.memory_space<vmem>>, vector<1x8x1xf32>,
    } else {
    }
    %c0_i32_3 = arith.constant 0 : i32
    %9 = arith.cmpi eq, %arg2, %c0_i32_3 : i32
    %10 = arith.extui %9 : i1 to i32
    %c0_i32_4 = arith.constant 0 : i32
    %11 = arith.cmpi ne, %10, %c0_i32_4 : i32
    scf.if %11 {
      %c0 = arith.constant 0 : index
      %c0_5 = arith.constant 0 : index
      %12 = vector.load %arg13[%c0, %c0_5] : memref<8x32xf32, #tpu.memory_space<vmem>>, vector<8x8xf32>
      %c0_6 = arith.constant 0 : index
      %c0_7 = arith.constant 0 : index
      %c0_8 = arith.constant 0 : index
      %13 = vector.load %arg12[%c0_6, %c0_7, %c0_8] : memref<4x8x1xf32, #tpu.memory_space<vmem>>, vector<1x8x1xf32>
      %14 = vector.shape_cast %13 : vector<1x8x1xf32> to vector<8x1xf32>
      %15 = tpu.reciprocal %14 {approx = true} : vector<8x1xf32> -> vector<8x1xf32>
      %16 = vector.broadcast %15 : vector<8x1xf32> to vector<8x8xf32>
      %17 = arith.mulf %12, %16 : vector<8x8xf32>
      %c0_9 = arith.constant 0 : index
      %c0_10 = arith.constant 0 : index
      %18 = vector.load %arg13[%c0_9, %c0_10] : memref<8x32xf32, #tpu.memory_space<vmem>>, vector<8x8xf32>
      tpu.vector_store %arg13[%c0_9, %c0_10], %17 {strides = array<i32>} : memref<8x32xf32, #tpu.memory_space<vmem>>, vector<8x8xf32>,
      %c0_11 = arith.constant 0 : index
      %c8 = arith.constant 8 : index
      %19 = vector.load %arg13[%c0_11, %c8] : memref<8x32xf32, #tpu.memory_space<vmem>>, vector<8x8xf32>
      %c1 = arith.constant 1 : index
      %c0_12 = arith.constant 0 : index
      %c0_13 = arith.constant 0 : index
      %20 = vector.load %arg12[%c1, %c0_12, %c0_13] : memref<4x8x1xf32, #tpu.memory_space<vmem>>, vector<1x8x1xf32>
      %21 = vector.shape_cast %20 : vector<1x8x1xf32> to vector<8x1xf32>
      %22 = tpu.reciprocal %21 {approx = true} : vector<8x1xf32> -> vector<8x1xf32>
      %23 = vector.broadcast %22 : vector<8x1xf32> to vector<8x8xf32>
      %24 = arith.mulf %19, %23 : vector<8x8xf32>
      %c0_14 = arith.constant 0 : index
      %c8_15 = arith.constant 8 : index
      %25 = vector.load %arg13[%c0_14, %c8_15] : memref<8x32xf32, #tpu.memory_space<vmem>>, vector<8x8xf32>
      tpu.vector_store %arg13[%c0_14, %c8_15], %24 {strides = array<i32>} : memref<8x32xf32, #tpu.memory_space<vmem>>, vector<8x8xf32>,
      %c0_16 = arith.constant 0 : index
      %c16 = arith.constant 16 : index
      %26 = vector.load %arg13[%c0_16, %c16] : memref<8x32xf32, #tpu.memory_space<vmem>>, vector<8x8xf32>
      %c2 = arith.constant 2 : index
      %c0_17 = arith.constant 0 : index
      %c0_18 = arith.constant 0 : index
      %27 = vector.load %arg12[%c2, %c0_17, %c0_18] : memref<4x8x1xf32, #tpu.memory_space<vmem>>, vector<1x8x1xf32>
      %28 = vector.shape_cast %27 : vector<1x8x1xf32> to vector<8x1xf32>
      %29 = tpu.reciprocal %28 {approx = true} : vector<8x1xf32> -> vector<8x1xf32>
      %30 = vector.broadcast %29 : vector<8x1xf32> to vector<8x8xf32>
      %31 = arith.mulf %26, %30 : vector<8x8xf32>
      %c0_19 = arith.constant 0 : index
      %c16_20 = arith.constant 16 : index
      %32 = vector.load %arg13[%c0_19, %c16_20] : memref<8x32xf32, #tpu.memory_space<vmem>>, vector<8x8xf32>
      tpu.vector_store %arg13[%c0_19, %c16_20], %31 {strides = array<i32>} : memref<8x32xf32, #tpu.memory_space<vmem>>, vector<8x8xf32>,
      %c0_21 = arith.constant 0 : index
      %c24 = arith.constant 24 : index
      %33 = vector.load %arg13[%c0_21, %c24] : memref<8x32xf32, #tpu.memory_space<vmem>>, vector<8x8xf32>
      %c3 = arith.constant 3 : index
      %c0_22 = arith.constant 0 : index
      %c0_23 = arith.constant 0 : index
      %34 = vector.load %arg12[%c3, %c0_22, %c0_23] : memref<4x8x1xf32, #tpu.memory_space<vmem>>, vector<1x8x1xf32>
      %35 = vector.shape_cast %34 : vector<1x8x1xf32> to vector<8x1xf32>
      %36 = tpu.reciprocal %35 {approx = true} : vector<8x1xf32> -> vector<8x1xf32>
      %37 = vector.broadcast %36 : vector<8x1xf32> to vector<8x8xf32>
      %38 = arith.mulf %33, %37 : vector<8x8xf32>
      %c0_24 = arith.constant 0 : index
      %c24_25 = arith.constant 24 : index
      %39 = vector.load %arg13[%c0_24, %c24_25] : memref<8x32xf32, #tpu.memory_space<vmem>>, vector<8x8xf32>
      tpu.vector_store %arg13[%c0_24, %c24_25], %38 {strides = array<i32>} : memref<8x32xf32, #tpu.memory_space<vmem>>, vector<8x8xf32>,
      %c0_26 = arith.constant 0 : index
      %c0_27 = arith.constant 0 : index
      %40 = vector.load %arg13[%c0_26, %c0_27] : memref<8x32xf32, #tpu.memory_space<vmem>>, vector<8x32xf32>
      %41 = arith.truncf %40 : vector<8x32xf32> to vector<8x32xbf16>
      %c0_28 = arith.constant 0 : index
      %c0_29 = arith.constant 0 : index
      %42 = vector.load %arg7[%c0_28, %c0_29] : memref<32x32xbf16, #tpu.memory_space<vmem>>, vector<32x32xbf16>
      %cst = arith.constant dense<0.000000e+00> : vector<8x32xf32>
      %43 = tpu.matmul %41, %42, %cst {dimension_numbers = #tpu.dot_dimension_numbers<[1], [0], [0], [1], [0, 0, 1, 1], [], []>} : vector<8x32xbf16>, vector<32x32xbf16>, vector<8x32xf32> -> vector<8x32xf32>
      %c0_30 = arith.constant 0 : index
      %c0_31 = arith.constant 0 : index
      %44 = vector.load %arg8[%c0_30, %c0_31] : memref<1x32xf32, #tpu.memory_space<vmem>>, vector<1x32xf32>
      %45 = vector.broadcast %44 : vector<1x32xf32> to vector<8x32xf32>
      %46 = arith.addf %43, %45 : vector<8x32xf32>
      %c0_32 = arith.constant 0 : index
      %c0_33 = arith.constant 0 : index
      %c0_34 = arith.constant 0 : index
      %47 = vector.load %arg9[%c0_32, %c0_33, %c0_34] : memref<1x8x32xf32, #tpu.memory_space<vmem>>, vector<1x8x32xf32>
      %48 = vector.shape_cast %47 : vector<1x8x32xf32> to vector<8x32xf32>
      %49 = vector.shape_cast %46 : vector<8x32xf32> to vector<1x8x32xf32>
      tpu.vector_store %arg9[%c0_32, %c0_33, %c0_34], %49 {strides = array<i32>} : memref<1x8x32xf32, #tpu.memory_space<vmem>>, vector<1x8x32xf32>,
    } else {
    }
    return
  }
  func.func @transform_0(%arg0: i32, %arg1: i32, %arg2: i32) -> (i32, i32, i32) {
    %c0_i32 = arith.constant 0 : i32
    %c0_i32_0 = arith.constant 0 : i32
    return %arg0, %arg1, %c0_i32 : i32, i32, i32
  }
  func.func @transform_1(%arg0: i32, %arg1: i32, %arg2: i32) -> (i32, i32, i32) {
    %c0_i32 = arith.constant 0 : i32
    %c0_i32_0 = arith.constant 0 : i32
    return %arg0, %arg2, %c0_i32 : i32, i32, i32
  }
  func.func @transform_2(%arg0: i32, %arg1: i32, %arg2: i32) -> (i32, i32) {
    %c0_i32 = arith.constant 0 : i32
    %c0_i32_0 = arith.constant 0 : i32
    %c0_i32_1 = arith.constant 0 : i32
    return %c0_i32, %c0_i32_0 : i32, i32
  }
  func.func @transform_3(%arg0: i32, %arg1: i32, %arg2: i32) -> (i32, i32) {
    %c0_i32 = arith.constant 0 : i32
    %c0_i32_0 = arith.constant 0 : i32
    %c0_i32_1 = arith.constant 0 : i32
    return %c0_i32, %c0_i32_0 : i32, i32
  }
  func.func @transform_4(%arg0: i32, %arg1: i32, %arg2: i32) -> (i32, i32) {
    %c0_i32 = arith.constant 0 : i32
    %c0_i32_0 = arith.constant 0 : i32
    %c0_i32_1 = arith.constant 0 : i32
    return %c0_i32, %c0_i32_0 : i32, i32
  }
  func.func @transform_5(%arg0: i32, %arg1: i32, %arg2: i32) -> (i32, i32) {
    %c0_i32 = arith.constant 0 : i32
    %c0_i32_0 = arith.constant 0 : i32
    %c0_i32_1 = arith.constant 0 : i32
    return %c0_i32, %c0_i32_0 : i32, i32
  }
  func.func @transform_6(%arg0: i32, %arg1: i32, %arg2: i32) -> (i32, i32, i32) {
    %c0_i32 = arith.constant 0 : i32
    %c0_i32_0 = arith.constant 0 : i32
    return %arg0, %arg1, %c0_i32 : i32, i32, i32
  }
}

</mosaic_0001>

<bundles_post_ra>
// kernel: tpu_custom_call.1
= control target key start
LH: loop header
LB: loop body
LE: loop exit
PB: predicated region body
PF: predicated region fallthrough
CT: control target
= control target key end

     0   :  { %s1863_s0 = inlined_call_operand.hbm [shape: f32[2,8,32], index: 0, kind: input, shape index: {}]   ;;  %s1864_s1 = inlined_call_operand.hbm [shape: f32[2,8,32], index: 1, kind: input, shape index: {}]   ;;  %s1865_s2 = inlined_call_operand.hbm [shape: bf16[32,32], index: 2, kind: input, shape index: {}]   ;;  %s1866_s3 = inlined_call_operand.hbm [shape: bf16[32,64], index: 3, kind: input, shape index: {}]   ;;  %s1867_s4 = inlined_call_operand.hbm [shape: bf16[32,32], index: 4, kind: input, shape index: {}]   ;;  %s1868_s5 = inlined_call_operand.vmem [shape: f32[1,32], index: 5, kind: input, shape index: {}]   ;;  %s1869_s6 = inlined_call_operand.hbm [shape: f32[2,8,32], index: 6, kind: output, shape index: {}]  }
   0x1   :  { %1873 = sst [smem:[#allocation25_spill]] %s1865_s2 }
   0x2   :  { %1874 = sst [smem:[#allocation26_spill]] %s1866_s3 }
   0x3   :  { %1875 = sst [smem:[#allocation27_spill]] %s1867_s4 }
   0x4   :  { %11 = vsyncpa [#allocation7], 0 }
   0x5   :  { %13 = vsyncpa [#allocation7 + $0x1], 0 }
   0x6   :  { %14 = vsyncpa [#allocation10], 0 }
   0x7   :  { %16 = vsyncpa [#allocation10 + $0x1], 0 }
   0x8   :  { %17 = vsyncpa [#allocation13], 0 }
   0x9   :  { %18 = vsyncpa [#allocation8], 0 }
   0xa   :  { %20 = vsyncpa [#allocation8 + $0x1], 0  ;;  %s1586_s21 = smov 0   ;;  %s1588_s22 = smov 0  }
   0xb   :  { %s1590_s23 = smov 0   ;;  %s1592_s24 = smov 0  }
   0xc   :  { %s1594_s25 = smov 0   ;;  %s1596_s26 = smov 0  }
   0xd LB: > { %1876 = sst [smem:[#allocation21_spill]] %s1519_s23  ;;  %s1617_s27 = sadd.s32 4294967295, %s1531_s26   ;;  %s1531_s26 = sphi %s1596_s26, %s26_s26   ;;  %s1527_s25 = sphi %s1594_s25, %s1892_s25   ;;  %s1523_s24 = sphi %s1592_s24, %s1891_s24   ;;  %s1519_s23 = sphi %s1590_s23, %s1890_s23   ;;  %s1515_s22 = sphi %s1588_s22, %s1894_s22   ;;  %s1511_s21 = sphi %s1586_s21, %s1893_s21  }
   0xe   : > { %1877 = sst [smem:[#allocation22_spill]] %s1527_s25  ;;  %p1085_p0 = scmp.ge.s32.totalorder %s1531_s26, 1 }
   0xf   : > { %p68_p1 = scmp.eq.s32.totalorder %s1617_s27, 0  ;;  %p218_p2 = scmp.lt.s32.totalorder %s1531_s26, 3 }
  0x10   : > { %s1878_s2 = sld [smem:[#allocation25_spill]]  ;;  %s1533_s8 = smov [#allocation11]  }
  0x11   : > { %p1625_p3 = pnand %p1085_p0, %p218_p2  ;;  %s231_s9 = sshll.u32 %s1533_s8, 4  ;;  %s232_s9 = int_to_ptr.vmem [resolvable:$true] %s231_s9 }
  0x12   : > { %p1089_p6 = scmp.ge.s32.totalorder %s1531_s26, 2  ;;  %s1881_s3 = sld [smem:[#allocation26_spill]] }
  0x13   : > { %p1164_p4 = pneg %p1625_p3  ;;  %s1534_s14 = smov 64  }
  0x14   : > { %s1535_s15 = smov 4   ;;  %s1536_s16 = smov [#allocation12]  }
  0x15   : > { %p1633_p5 = pnand %p1164_p4, %p68_p1  ;;  %s245_s17 = sshll.u32 %s1536_s16, 4  ;;  %s246_s17 = int_to_ptr.vmem [resolvable:$true] %s245_s17 }
  0x16   : > { %s229_s30 = sshll.u32 %s1878_s2, 4  ;;  %s1882_s4 = sld [smem:[#allocation27_spill]]  ;;  %s230_s30 = int_to_ptr.hbm [resolvable:$true] %s229_s30 }
  0x17   : > { %1167 = dma.hbm_to_vmem [thread:$0]  (!%p1633_p5), %s230_s30, 256, %s232_s9, [#allocation10], %s1534_s14, %s1534_s14, %s1535_s15  }
  0x18   : > { %s243_s13 = sshll.u32 %s1881_s3, 4  ;;  %s1537_s28 = smov [#allocation14]   ;;  %s244_s13 = int_to_ptr.hbm [resolvable:$true] %s243_s13 }
  0x19   : > { %1170 = dma.hbm_to_vmem [thread:$0]  (!%p1633_p5), %s244_s13, 256, %s246_s17, [#allocation13], %s1534_s14, %s1534_s14, %s1535_s15  }
  0x1a   : > { %s259_s29 = sshll.u32 %s1537_s28, 4  ;;  %s1084_s30 = sadd.s32 4294967294, %s1531_s26   ;;  %s260_s29 = int_to_ptr.vmem [resolvable:$true] %s259_s29 }
  0x1b   : > { %s45_s8 = sadd.s32 1, %s1527_s25  ;;  %s54_s9 = sadd.s32 1, %s1519_s23 }
  0x1c   : > { %s257_s20 = sshll.u32 %s1882_s4, 4  ;;  %p47_p7 = scmp.ge.s32.totalorder %s45_s8, 2  ;;  %s258_s20 = int_to_ptr.hbm [resolvable:$true] %s257_s20 }
  0x1d   : > { %1173 = dma.hbm_to_vmem [thread:$0]  (!%p1633_p5), %s258_s20, 256, %s260_s29, [#allocation13], %s1534_s14, %s1534_s14, %s1535_s15  }
  0x1e   : > { %p61_p8 = scmp.ne.s32.totalorder %s1519_s23, %s1515_s22  ;;  %p62_p9 = scmp.eq.s32.totalorder %s1531_s26, 0 }
  0x1f   : > { %p67_p10 = scmp.ne.s32.totalorder %s1515_s22, %s1511_s21  ;;  %s1896_s8 = smov (%p47_p7, %s45_s8), 0 }
  0x20   : > { %1883 = sst [smem:[#allocation23_spill]] %s1896_s8  ;;  %p1660_p11 = por %p62_p9, %p61_p8 }
  0x21   : > { %p1666_p12 = por %p68_p1, %p67_p10  ;;  %s49_s12 = ssub.s32 %s1527_s25, %s1896_s8 }
  0x22   : > { %p205_p13 = scmp.eq.s32.totalorder %s1617_s27, 1  ;;  %p52_p0 = scmp.eq.s32.totalorder %s49_s12, 0 }
  0x23   : > { %p211_p2 = scmp.eq.s32.totalorder %s1084_s30, 1  ;;  %p1188_p5 = scmp.lt.s32.totalorder %s1531_s26, 2 }
  0x24   : > { %p1673_p4 = por %p205_p13, %p61_p8  ;;  %s276_s16 = sand.u32 1, %s1519_s23  }
  0x25   : > { %s1679_s14 = scalar_select %p52_p0, %s1519_s23, %s54_s9  }
  0x26   : > { %p1681_p7 = por %p211_p2, %p67_p10  ;;  %s1090_s17 = sshll.u32 %s276_s16, 3 }
  0x27   : > { %1887 = sst [smem:[#allocation24_spill]] %s1679_s14  ;;  %s1091_s18 = sshll.u32 %s1527_s25, 3 }
  0x28   : > { %s285_s28 = scalar_lea.hbm %s1863_s0, %s1091_s18  ;;  %s280_s29 = scalar_lea.vmem [#allocation6], %s1090_s17 }
  0x29   : > { %s289_s30 = sshll.u32 %s280_s29, 4  ;;  %s287_s12 = sshll.u32 %s285_s28, 4  ;;  %s290_s30 = int_to_ptr.vmem [resolvable:$true] %s289_s30  ;;  %s288_s12 = int_to_ptr.hbm [resolvable:$true] %s287_s12 }
  0x2a   : > { %p1175_p8 = pnand %p1188_p5, %p1660_p11  ;;  %s305_s3 = scalar_lea.hbm %s1864_s1, %s1091_s18 }
  0x2b   : > { %s296_s4 = sand.u32 1, %s1531_s26   ;;  %s277_s8 = scalar_lea.sflag [#allocation7], %s276_s16 }
  0x2c   : > { %1177 = dma.hbm_to_vmem [thread:$0]  (!%p1175_p8), %s288_s12, 128, %s290_s30, %s277_s8  }
  0x2d   : > { %s307_s14 = sshll.u32 %s305_s3, 4  ;;  %s300_s25 = scalar_lea.vmem [#allocation9], %s1090_s17  ;;  %s308_s14 = int_to_ptr.hbm [resolvable:$true] %s307_s14 }
  0x2e   : > { %s309_s23 = sshll.u32 %s300_s25, 4  ;;  %s297_s19 = scalar_lea.sflag [#allocation10], %s296_s4  ;;  %s310_s23 = int_to_ptr.vmem [resolvable:$true] %s309_s23 }
  0x2f   : > { %1180 = dma.hbm_to_vmem [thread:$0]  (!%p1175_p8), %s308_s14, 128, %s310_s23, %s297_s19  }
  0x30   : > { %318 = sbr.rel (%p1625_p3) target bundleno = 1409 (0x581), region = 44  ;;  %s1699_s11 = sand.u32 (!%p1625_p3), 1, %s1515_s22  }
  0x31   : > { %s1702_s2 = sshll.u32 (!%p1625_p3), %s1699_s11, 3  ;;  %s321_s8 = scalar_lea.sflag (!%p1625_p3), [#allocation7], %s1699_s11 }
  0x32   : > { %s324_s3 = scalar_lea.vmem (!%p1625_p3), [#allocation6], %s1702_s2 }
  0x35   : > { %1490 = dma.done.wait (%p1666_p12), %s321_s8, 128  }
  0x36   : > { %1492 = vsyncadd (%p1666_p12), %s321_s8, 4294967168  ;;  %s330_s4 = sand.u32 1, %s1617_s27   ;;  %s334_s25 = scalar_lea.vmem [#allocation9], %s1702_s2 }
  0x37   : > { %s331_s23 = scalar_lea.sflag [#allocation10], %s330_s4 }
  0x38   : > { %1494 = dma.done.wait (%p1666_p12), %s331_s23, 128  }
  0x39   : > { %1496 = vsyncadd (%p1666_p12), %s331_s23, 4294967168 }
  0x3a   : > { %1498 = dma.done.wait (%p68_p1), [#allocation10], 256  }
  0x3b   : > { %1500 = vsyncadd (%p68_p1), [#allocation10], 4294967040 }
  0x3c   : > { %1502 = dma.done.wait (%p68_p1), [#allocation13], 512  }
  0x3d   : > { %1504 = vsyncadd (%p68_p1), [#allocation13], 4294966784  ;;  %vm407_vm0 = vcmask 261120   ;;  %v1538_v0 = vmov 0.0   ;;  %v1141_v1 = vld [vmem:[#allocation11 + $0x8] sm:$0xff]  ;;  %v1143_v2 = vld [vmem:[#allocation12 + $0x8] sm:$0xff]  ;;  %v480_v36 = vlaneseq }
  0x3e   : > { %436 = vst.msk [vmem:[#allocation5] sm:$0xff] %vm407_vm0, %v1538_v0  ;;  %v1140_v3 = vld [vmem:[#allocation11] sm:$0xff]  ;;  %v1142_v4 = vld [vmem:[#allocation12] sm:$0xff]  ;;  %417 = vmatpush.bf16.msra.mxu0 %v1141_v1  ;;  %472 = vmatpush.bf16.msra.mxu1 %v1143_v2  ;;  %vm425_vm1 = vcmask 257024   ;;  %vm490_vm2 = vcmask 64512   ;;  %s1539_s27 = smov 96  }
  0x3f   : > { %v389_v5 = vld [vmem:[%s324_s3] sm:$0xff]  ;;  %v444_v6 = vld [vmem:[%s334_s25] sm:$0xff]  ;;  %s1540_s7 = smov 120   ;;  %s1541_s10 = smov 112   ;;  %vm427_vm3 = vcmask 7168   ;;  %vm551_vm4 = vcmask 1043456  }
  0x40   : > { %v390_v7 = vpack.c.bf16 %v389_v5, %v389_v5  ;;  %v445_v8 = vpack.c.bf16 %v444_v6, %v444_v6  ;;  %s1542_s14 = smov 104   ;;  %v1543_v31 = vmov -inf   ;;  %432 = vst.msk [vmem:[#allocation4] sm:$0xff] %vm427_vm3, %v1538_v0  ;;  %v1753_v37 = vshrl.u32 %v480_v36, 7  ;;  %s1545_s16 = smov 72  }
  0x41   : > { %428 = vst.msk [vmem:[#allocation3] sm:$0xff] %vm427_vm3, %v1543_v31  ;;  %v1755_v38 = vand.u32 127, %v480_v36  ;;  %v1544_v44 = vmov 0   ;;  %s1546_s17 = smov 80   ;;  %s1547_s18 = smov 88   ;;  %vm658_vm6 = vcmask 130112  }
  0x42   : > { %418 = vmatpush.bf16.msra.mxu0 %v1140_v3  ;;  %473 = vmatpush.bf16.msra.mxu1 %v1142_v4  ;;  %429 = vst.msk [vmem:[#allocation3 + $0x8] sm:$0xff] %vm427_vm3, %v1543_v31  ;;  %s1548_s20 = smov 16   ;;  %s1549_s28 = smov 8   ;;  %vm748_vm7 = vcmask 195712   ;;  %vm838_vm8 = vcmask 261312  }
  0x43   : > { %430 = vst.msk [vmem:[#allocation3 + $0x10] sm:$0xff] %vm427_vm3, %v1543_v31  ;;  %vm488_vm5 = vcmp.ge.s32.totalorder %v1753_v37, %v1755_v38  ;;  %1259 = vset.pattern.permute.xlu0 %v1544_v44  ;;  %1261 = vset.pattern.permute.xlu1 %v1544_v44  ;;  %s1550_s29 = smov 24   ;;  %s1137_s30 = sshll.u32 %s1523_s24, 3 }
  0x44   : > { %431 = vst.msk [vmem:[#allocation3 + $0x18] sm:$0xff] %vm427_vm3, %v1543_v31  ;;  %1260 = vset.pattern.permute.xlu2 %v1544_v44  ;;  %s943_s19 = scalar_lea.hbm %s1869_s6, %s1137_s30  ;;  %s383_s4 = scalar_lea.vmem [#allocation15], %s1702_s2 }
  0x45   : > { %1109 = vmatmul.msk.bf16.vlgmr.msra.gmra.mxu0 %vm407_vm0, %v390_v7  ;;  %1118 = vmatmul.msk.bf16.vlgmr.msra.gmra.mxu1 %vm407_vm0, %v445_v8  ;;  %433 = vst.msk [vmem:[#allocation4 + $0x8] sm:$0xff] %vm427_vm3, %v1538_v0  ;;  %s945_s23 = sshll.u32 %s383_s4, 4  ;;  %s947_s25 = sshll.u32 %s943_s19, 4  ;;  %s946_s23 = int_to_ptr.vmem [resolvable:$true] %s945_s23  ;;  %s948_s25 = int_to_ptr.hbm [resolvable:$true] %s947_s25 }
  0x46   : > { %434 = vst.msk [vmem:[#allocation4 + $0x10] sm:$0xff] %vm427_vm3, %v1538_v0  ;;  %s1451_s24 = sshra.s32 %s948_s25, 4  ;;  %s1457_s2 = scalar_lea.hbm %s1869_s6, 16  ;;  %s1452_s24 = int_to_ptr.hbm [resolvable:$true] %s1451_s24 }
  0x47   : > { %435 = vst.msk [vmem:[#allocation4 + $0x18] sm:$0xff] %vm427_vm3, %v1538_v0  ;;  %p1458_p10 = scmp.lt.s32.totalorder %s1452_s24, %s1869_s6 }
  0x48   : > { %v511_v45 = vld [vmem:[#allocation3] sm:$0xff] }
  0x4a   : > { %v690_v56 = vld [vmem:[#allocation3 + $0x10] sm:$0xff] }
  0xc2   : > { %v420_v9 = vpop.f32.mrf.mxu0  ;;  %v475_v10 = vpop.f32.mrf.mxu1 }
  0xc3   : > { %v424_v11 = vpack.c.bf16 %v420_v9, %v420_v9  ;;  %v479_v12 = vpack.c.bf16 %v475_v10, %v475_v10  ;;  %v535_v9 = vld [vmem:[#allocation5] sm:$0xff] }
  0xc5   : > { %426 = vst.msk [vmem:[#allocation2] sm:$0xf] %vm425_vm1, %v424_v11  ;;  %v544_v13 = vunpack.c.l.b16 %v479_v12  ;;  %v495_v14 = vsel %vm490_vm2, %v479_v12, 0 }
  0xc6   : > { %504 = vmatpush.bf16.xpose.msra.mxu2 %v495_v14 }
  0xc7   : > { %v1729_v15 = vpack.c.b16 %v544_v13, %v544_v13 }
  0xc9   : > { %546 = vrot.lane.b32.xlu1 %v1729_v15, %s1539_s27  ;;  %s932_s27 = scalar_lea.sflag [#allocation8], %s1699_s11 }
  0xca   : > { %v422_v16 = vpop.f32.mrf.mxu0  ;;  %v477_v17 = vpop.f32.mrf.mxu1 }
  0xcc   : > { %v489_v18 = vld [vmem:[#allocation2] sm:$0xf] }
  0xcd   : > { %v571_v19 = vld [vmem:[#allocation2] sm:$0xf]  ;;  %1119 = vmatmul.msk.bf16.vlgmr.msra.gmra.mxu2 %vm490_vm2, %v489_v18 }
  0xce   : > { %v573_v20 = vunpack.c.l.b16 %v571_v19  ;;  %v661_v22 = vld [vmem:[#allocation2] sm:$0xf] }
  0xcf   : > { %v663_v23 = vunpack.c.l.b16 %v661_v22  ;;  %v751_v25 = vld [vmem:[#allocation2] sm:$0xf] }
  0xd0   : > { %v574_v21 = vpack.c.b16 %v573_v20, %v573_v20  ;;  %v753_v26 = vunpack.c.l.b16 %v751_v25 }
  0xd1   : > { %577 = vrot.lane.b32.xlu1 %v1729_v15, %s1540_s7  ;;  %v664_v24 = vpack.c.b16 %v663_v23, %v663_v23 }
  0xd2   : > { %575 = vrot.lane.b32.xlu2 %v574_v21, %s1540_s7  ;;  %v754_v27 = vpack.c.b16 %v753_v26, %v753_v26  ;;  %v707_v26 = vld [vmem:[#allocation4 + $0x10] sm:$0xff]  ;;  %s1453_s7 = scalar_lea.hbm %s1452_s24, 8 }
  0xd3   : > { %p1454_p1 = scmp.ne.s32.totalorder %s1452_s24, %s1453_s7  ;;  %p1459_p11 = scmp.lt.s32.totalorder %s1457_s2, %s1453_s7 }
  0xd5   : > { %p1455_p3 = pnand %p1454_p1, %p1673_p4  ;;  %p1460_p12 = por %p1459_p11, %p1458_p10 }
  0xd7   : > { %p1456_p9 = pneg %p1455_p3 }
  0xd9   : > { %665 = vrot.lane.b32.xlu1 %v664_v24, %s1541_s10  ;;  %p1461_p13 = pnand %p1460_p12, %p1456_p9 }
  0xda   : > { %667 = vrot.lane.b32.xlu2 %v1729_v15, %s1541_s10 }
  0xe1   : > { %755 = vrot.lane.b32.xlu1 %v754_v27, %s1542_s14 }
  0xe2   : > { %757 = vrot.lane.b32.xlu2 %v1729_v15, %s1542_s14 }
 0x12c   : > { %v1736_v28 = vpop.permute.xlu2 %575 }
 0x134   : > { %v668_v29 = vpop.permute.xlu2 %667 }
 0x135   : > { %v673_v30 = vsel %vm490_vm2, %v668_v29, 0 }
 0x136   : > { %682 = vmatpush.bf16.xpose.msrb.mxu1 %v673_v30  ;;  %v600_v30 = vld [vmem:[#allocation3 + $0x8] sm:$0xff] }
 0x13b   : > { %v547_v32 = vpop.permute.xlu1 %546 }
 0x13c   : > { %v553_v33 = vsel %vm551_vm4, %v547_v32, 0  ;;  %v758_v62 = vpop.permute.xlu2 %757 }
 0x13d   : > { %562 = vmatpush.bf16.msra.mxu3 %v553_v33  ;;  %v763_v1 = vsel %vm490_vm2, %v758_v62, 0 }
 0x143   : > { %v578_v34 = vpop.permute.xlu1 %577 }
 0x144   : > { %v583_v35 = vsel %vm490_vm2, %v578_v34, 0  ;;  %v780_v34 = vld [vmem:[#allocation3 + $0x18] sm:$0xff] }
 0x145   : > { %592 = vmatpush.bf16.xpose.msrb.mxu3 %v583_v35 }
 0x14b   : > { %v666_v39 = vpop.permute.xlu1 %665 }
 0x14c   : > { %1123 = vmatmul.msk.bf16.vlgmr.msrb.gmra.mxu1 %vm490_vm2, %v666_v39 }
 0x150   : > { %v506_v40 = vpop.f32.mrf.mxu2 }
 0x151   : > { %v510_v41 = vsel %vm488_vm5, %v506_v40, -inf }
 0x152   : > { %v512_v42 = vsel %vm490_vm2, %v510_v41, -inf }
 0x153   : > { %513 = vmax.xlane.f32.xlu0 %v512_v42  ;;  %v756_v53 = vpop.permute.xlu1 %755 }
 0x158   : > { %v508_v43 = vpop.f32.mrf.mxu2 }
 0x1c6   : > { %v514_v46 = vpop.xlane.xlu0 %513 }
 0x1c7   : > { %v515_v47 = vmax.f32 %v511_v45, %v514_v46 }
 0x1c9   : > { %v516_v48 = vsub.f32 %v511_v45, %v515_v47  ;;  %570 = vst.msk [vmem:[#allocation3] sm:$0xff] %vm427_vm3, %v515_v47  ;;  %v684_v49 = vpop.f32.mrf.mxu1  ;;  %521 = vperm.xlu0 %1259, %v515_v47  }
 0x1ca   : > { %v688_v50 = vsel %vm488_vm5, %v684_v49, -inf }
 0x1cb   : > { %v691_v51 = vsel %vm490_vm2, %v688_v50, -inf  ;;  %v517_v63 = vmul.f32 1.442695, %v516_v48 }
 0x1cc   : > { %692 = vmax.xlane.f32.xlu1 %v691_v51 }
 0x1d1   : > { %v686_v52 = vpop.f32.mrf.mxu1 }
 0x23b   : > { %v522_v54 = vpop.permute.xlu0 %521 }
 0x23c   : > { %v524_v55 = vsub.f32 %v510_v41, %v522_v54 }
 0x23e   : > { %v525_v57 = vmul.f32 1.442695, %v524_v55 }
 0x23f   : > { %v693_v58 = vpop.xlane.xlu1 %692 }
 0x240   : > { %1263 = vpow2.f32 %v525_v57  ;;  %v694_v59 = vmax.f32 %v690_v56, %v693_v58 }
 0x241   : > { %1265 = vpow2.f32 %v517_v63 }
 0x242   : > { %v695_v60 = vsub.f32 %v690_v56, %v694_v59  ;;  %750 = vst.msk [vmem:[#allocation3 + $0x10] sm:$0xff] %vm427_vm3, %v694_v59  ;;  %700 = vperm.xlu1 %1261, %v694_v59   ;;  %v527_v59 = vld [vmem:[#allocation4] sm:$0xff] }
 0x244   : > { %v696_v24 = vmul.f32 1.442695, %v695_v60 }
 0x246   : > { %v1770_v61 = vpop.eup %1263 }
 0x247   : > { %v542_v0 = vpack.c.bf16 %v1770_v61, %v1770_v61  ;;  %v1777_v2 = vpop.eup %1265  ;;  %v529_v41 = vsel %vm490_vm2, %v1770_v61, 0.0 }
 0x248   : > { %v528_v60 = vmul.f32 %v1777_v2, %v527_v59 }
 0x249   : > { %1120 = vmatmul.msk.bf16.vlgmr.msra.gmra.mxu3 %vm490_vm2, %v542_v0  ;;  %v617_v0 = vld [vmem:[#allocation4 + $0x8] sm:$0xff] }
 0x24a   : > { %772 = vmatpush.bf16.xpose.msra.mxu3 %v763_v1  ;;  %812 = vrot.lane.b32.xlu1 %v1729_v15, %s1545_s16 }
 0x252   : > { %538 = vperm.xlu1 %1261, %v1777_v2  }
 0x259   : > { %1121 = vmatmul.msk.bf16.vlgmr.msrb.gmra.mxu3 %vm490_vm2, %v1736_v28 }
 0x269   : > { %1125 = vmatmul.msk.bf16.vlgmr.msra.gmra.mxu3 %vm490_vm2, %v756_v53 }
 0x2b4   : > { %v701_v3 = vpop.permute.xlu1 %700 }
 0x2b5   : > { %v703_v4 = vsub.f32 %v688_v50, %v701_v3 }
 0x2b7   : > { %v704_v5 = vmul.f32 1.442695, %v703_v4 }
 0x2b9   : > { %1267 = vpow2.f32 %v704_v5 }
 0x2ba   : > { %1269 = vpow2.f32 %v696_v24 }
 0x2bc   : > { %v813_v6 = vpop.permute.xlu1 %812 }
 0x2bd   : > { %v818_v48 = vsel %vm551_vm4, %v813_v6, 0 }
 0x2bf   : > { %v1268_v7 = vpop.eup %1267 }
 0x2c0   : > { %v709_v8 = vsel %vm490_vm2, %v1268_v7, 0.0  ;;  %v1270_v25 = vpop.eup %1269  ;;  %v721_v40 = vpack.c.bf16 %v1268_v7, %v1268_v7 }
 0x2c1   : > { %710 = vadd.xlane.f32.xlu1 %v709_v8  ;;  %v708_v27 = vmul.f32 %v1270_v25, %v707_v26  ;;  %v797_v8 = vld [vmem:[#allocation4 + $0x18] sm:$0xff] }
 0x2c4   : > { %v539_v10 = vpop.permute.xlu1 %538 }
 0x2c5   : > { %v541_v11 = vmul.f32 %v539_v10, %v535_v9 }
 0x2cc   : > { %v564_v12 = vpop.f32.mrf.mxu3 }
 0x2cd   : > { %v568_v13 = vadd.f32 %v564_v12, %v541_v11 }
 0x2cf   : > { %569 = vst.msk [vmem:[#allocation5] sm:$0xff] %vm490_vm2, %v568_v13 }
 0x2d4   : > { %v566_v14 = vpop.f32.mrf.mxu3 }
 0x2d6   : > { %v624_v24 = vld [vmem:[#allocation5] sm:$0xff] }
 0x2dc   : > { %v594_v16 = vpop.f32.mrf.mxu3 }
 0x2dd   : > { %v598_v17 = vsel %vm488_vm5, %v594_v16, -inf }
 0x2de   : > { %v601_v18 = vsel %vm490_vm2, %v598_v17, -inf }
 0x2df   : > { %602 = vmax.xlane.f32.xlu2 %v601_v18 }
 0x2e4   : > { %v596_v19 = vpop.f32.mrf.mxu3 }
 0x2ec   : > { %v774_v20 = vpop.f32.mrf.mxu3 }
 0x2ed   : > { %v778_v21 = vsel %vm488_vm5, %v774_v20, -inf }
 0x2ee   : > { %v781_v22 = vsel %vm490_vm2, %v778_v21, -inf }
 0x2ef   : > { %782 = vmax.xlane.f32.xlu0 %v781_v22 }
 0x2f4   : > { %v776_v23 = vpop.f32.mrf.mxu3 }
 0x303   : > { %722 = vrot.lane.b32.xlu0 %v1729_v15, %s1546_s17 }
 0x334   : > { %v711_v28 = vpop.xlane.xlu1 %710 }
 0x335   : > { %v712_v29 = vadd.f32 %v711_v28, %v708_v27 }
 0x337   : > { %713 = vst.msk [vmem:[#allocation4 + $0x10] sm:$0xff] %vm427_vm3, %v712_v29 }
 0x33e   : > { %v869_v13 = vld [vmem:[#allocation4 + $0x10] sm:$0xff] }
 0x352   : > { %v603_v31 = vpop.xlane.xlu2 %602 }
 0x353   : > { %v604_v32 = vmax.f32 %v600_v30, %v603_v31 }
 0x355   : > { %v605_v33 = vsub.f32 %v600_v30, %v604_v32  ;;  %660 = vst.msk [vmem:[#allocation3 + $0x8] sm:$0xff] %vm427_vm3, %v604_v32  ;;  %610 = vperm.xlu2 %1260, %v604_v32  }
 0x357   : > { %v606_v42 = vmul.f32 1.442695, %v605_v33 }
 0x359   : > { %1271 = vpow2.f32 %v606_v42  ;;  %v1144_v42 = vld [vmem:[#allocation14] sm:$0xff] }
 0x35d   : > { %632 = vrot.lane.b32.xlu2 %v1729_v15, %s1547_s18 }
 0x35f   : > { %v1272_v15 = vpop.eup %1271 }
 0x360   : > { %v618_v1 = vmul.f32 %v1272_v15, %v617_v0 }
 0x362   : > { %v783_v35 = vpop.xlane.xlu0 %782 }
 0x363   : > { %v784_v36 = vmax.f32 %v780_v34, %v783_v35 }
 0x365   : > { %v785_v37 = vsub.f32 %v780_v34, %v784_v36  ;;  %840 = vst.msk [vmem:[#allocation3 + $0x18] sm:$0xff] %vm427_vm3, %v784_v36  ;;  %790 = vperm.xlu2 %1260, %v784_v36  }
 0x367   : > { %v786_v5 = vmul.f32 1.442695, %v785_v37 }
 0x375   : > { %v723_v38 = vpop.permute.xlu0 %722 }
 0x376   : > { %v728_v39 = vsel %vm551_vm4, %v723_v38, 0 }
 0x377   : > { %737 = vmatpush.bf16.msrb.mxu2 %v728_v39 }
 0x37a   : > { %1124 = vmatmul.msk.bf16.vlgmr.msrb.gmra.mxu2 %vm490_vm2, %v721_v40 }
 0x38e   : > { %530 = vadd.xlane.f32.xlu2 %v529_v41  ;;  %v1145_v41 = vld [vmem:[#allocation14 + $0x8] sm:$0xff] }
 0x38f   : > { %923 = vmatpush.bf16.msra.mxu1 %v1145_v41 }
 0x393   : > { %924 = vmatpush.bf16.msra.mxu1 %v1144_v42 }
 0x3a6   : > { %627 = vperm.xlu2 %1260, %v1272_v15  }
 0x3af   : > { %v611_v43 = vpop.permute.xlu2 %610 }
 0x3b0   : > { %v613_v44 = vsub.f32 %v598_v17, %v611_v43 }
 0x3b2   : > { %v614_v45 = vmul.f32 1.442695, %v613_v44 }
 0x3b4   : > { %1273 = vpow2.f32 %v614_v45 }
 0x3b7   : > { %v633_v46 = vpop.permute.xlu2 %632 }
 0x3b8   : > { %v638_v47 = vsel %vm551_vm4, %v633_v46, 0 }
 0x3b9   : > { %647 = vmatpush.bf16.msrb.mxu0 %v638_v47 }
 0x3ba   : > { %v1274_v49 = vpop.eup %1273 }
 0x3bb   : > { %v619_v50 = vsel %vm490_vm2, %v1274_v49, 0.0  ;;  %v631_v51 = vpack.c.bf16 %v1274_v49, %v1274_v49 }
 0x3bc   : > { %620 = vadd.xlane.f32.xlu0 %v619_v50 }
 0x3bd   : > { %827 = vmatpush.bf16.msra.mxu0 %v818_v48 }
 0x3be   : > { %1122 = vmatmul.msk.bf16.vlgmr.msrb.gmra.mxu0 %vm490_vm2, %v631_v51 }
 0x3bf   : > { %v791_v52 = vpop.permute.xlu2 %790 }
 0x3c0   : > { %v793_v53 = vsub.f32 %v778_v21, %v791_v52 }
 0x3c2   : > { %v794_v54 = vmul.f32 1.442695, %v793_v53  ;;  %v1262_v53 = vld [vmem:[%s1868_s5] ss:$0 sm:$0xff] }
 0x3c4   : > { %1275 = vpow2.f32 %v794_v54 }
 0x3c5   : > { %1277 = vpow2.f32 %v786_v5 }
 0x3ca   : > { %v1276_v55 = vpop.eup %1275 }
 0x3cb   : > { %v811_v56 = vpack.c.bf16 %v1276_v55, %v1276_v55  ;;  %v799_v57 = vsel %vm490_vm2, %v1276_v55, 0.0  ;;  %v1278_v7 = vpop.eup %1277 }
 0x3cc   : > { %800 = vadd.xlane.f32.xlu1 %v799_v57  ;;  %v798_v9 = vmul.f32 %v1278_v7, %v797_v8 }
 0x3ce   : > { %1126 = vmatmul.msk.bf16.vlgmr.msra.gmra.mxu0 %vm490_vm2, %v811_v56 }
 0x3e5   : > { %717 = vperm.xlu1 %1261, %v1270_v25  }
 0x3fd   : > { %v739_v58 = vpop.f32.mrf.mxu2 }
 0x3fe   : > { %744 = vrot.lane.b32.xlu2 %v739_v58, %s1548_s20 }
 0x401   : > { %v531_v61 = vpop.xlane.xlu2 %530 }
 0x402   : > { %v532_v62 = vadd.f32 %v531_v61, %v528_v60 }
 0x404   : > { %534 = vst.msk [vmem:[#allocation4] sm:$0xff] %vm427_vm3, %v532_v62 }
 0x405   : > { %v741_v63 = vpop.f32.mrf.mxu2 }
 0x409   : > { %v628_v23 = vpop.permute.xlu2 %627 }
 0x40a   : > { %v630_v25 = vmul.f32 %v628_v23, %v624_v24 }
 0x40b   : > { %v845_v11 = vld [vmem:[#allocation4] sm:$0xff] }
 0x40c   : > { %1279 = vrcp.f32 %v845_v11 }
 0x412   : > { %v1280_v17 = vpop.eup %1279 }
 0x42f   : > { %v621_v3 = vpop.xlane.xlu0 %620 }
 0x430   : > { %v622_v4 = vadd.f32 %v621_v3, %v618_v1 }
 0x432   : > { %623 = vst.msk [vmem:[#allocation4 + $0x8] sm:$0xff] %vm427_vm3, %v622_v4 }
 0x439   : > { %v857_v16 = vld [vmem:[#allocation4 + $0x8] sm:$0xff] }
 0x43b   : > { %v649_v6 = vpop.f32.mrf.mxu0 }
 0x43c   : > { %654 = vrot.lane.b32.xlu0 %v649_v6, %s1549_s28 }
 0x43f   : > { %v801_v2 = vpop.xlane.xlu1 %800 }
 0x440   : > { %v802_v10 = vadd.f32 %v801_v2, %v798_v9 }
 0x442   : > { %803 = vst.msk [vmem:[#allocation4 + $0x18] sm:$0xff] %vm427_vm3, %v802_v10 }
 0x443   : > { %v651_v12 = vpop.f32.mrf.mxu0 }
 0x444   : > { %807 = vperm.xlu0 %1259, %v1278_v7  }
 0x449   : > { %v881_v14 = vld [vmem:[#allocation4 + $0x18] sm:$0xff] }
 0x44a   : > { %1281 = vrcp.f32 %v881_v14 }
 0x44b   : > { %v829_v18 = vpop.f32.mrf.mxu0  ;;  %1283 = vrcp.f32 %v869_v13 }
 0x44c   : > { %849 = vperm.xlu0 %1259, %v1280_v17   ;;  %834 = vrot.lane.b32.xlu2 %v829_v18, %s1550_s29  ;;  %1285 = vrcp.f32 %v857_v16 }
 0x450   : > { %v1282_v19 = vpop.eup %1281 }
 0x451   : > { %v1284_v20 = vpop.eup %1283  ;;  %885 = vperm.xlu1 %1261, %v1282_v19  }
 0x452   : > { %v1286_v21 = vpop.eup %1285 }
 0x453   : > { %v831_v22 = vpop.f32.mrf.mxu0 }
 0x454   : > { %873 = vperm.xlu0 %1259, %v1284_v20   ;;  %861 = vperm.xlu2 %1260, %v1286_v21  }
 0x457   : > { %v718_v28 = vpop.permute.xlu1 %717 }
 0x458   : > { %v745_v31 = vpop.permute.xlu2 %744 }
 0x4a6   : > { %v835_v36 = vpop.permute.xlu2 %834 }
 0x4ae   : > { %v655_v26 = vpop.permute.xlu0 %654  ;;  %v862_v15 = vpop.permute.xlu2 %861 }
 0x4af   : > { %v657_v27 = vadd.f32 %v655_v26, %v630_v25 }
 0x4b1   : > { %659 = vst.msk [vmem:[#allocation5] sm:$0xff] %vm658_vm6, %v657_v27 }
 0x4b6   : > { %v808_v34 = vpop.permute.xlu0 %807 }
 0x4b8   : > { %v714_v29 = vld [vmem:[#allocation5] sm:$0xff] }
 0x4b9   : > { %v720_v30 = vmul.f32 %v718_v28, %v714_v29 }
 0x4bb   : > { %v747_v32 = vadd.f32 %v745_v31, %v720_v30 }
 0x4bd   : > { %749 = vst.msk [vmem:[#allocation5] sm:$0xff] %vm748_vm7, %v747_v32 }
 0x4be   : > { %v850_v38 = vpop.permute.xlu0 %849 }
 0x4c3   : > { %v886_v48 = vpop.permute.xlu1 %885 }
 0x4c4   : > { %v804_v33 = vld [vmem:[#allocation5] sm:$0xff] }
 0x4c5   : > { %v810_v35 = vmul.f32 %v808_v34, %v804_v33 }
 0x4c6   : > { %v874_v45 = vpop.permute.xlu0 %873 }
 0x4c7   : > { %v837_v37 = vadd.f32 %v835_v36, %v810_v35 }
 0x4c9   : > { %839 = vst.msk [vmem:[#allocation5] sm:$0xff] %vm838_vm8, %v837_v37 }
 0x4d0   : > { %v844_v39 = vld [vmem:[#allocation5] sm:$0xff] }
 0x4d1   : > { %v852_v40 = vmul.f32 %v850_v38, %v844_v39 }
 0x4d3   : > { %854 = vst.msk [vmem:[#allocation5] sm:$0xff] %vm490_vm2, %v852_v40 }
 0x4da   : > { %v855_v43 = vld [vmem:[#allocation5] sm:$0xff] }
 0x4db   : > { %v864_v44 = vmul.f32 %v862_v15, %v855_v43 }
 0x4dd   : > { %866 = vst.msk [vmem:[#allocation5] sm:$0xff] %vm658_vm6, %v864_v44 }
 0x4e4   : > { %v867_v46 = vld [vmem:[#allocation5] sm:$0xff] }
 0x4e5   : > { %v876_v47 = vmul.f32 %v874_v45, %v867_v46 }
 0x4e7   : > { %878 = vst.msk [vmem:[#allocation5] sm:$0xff] %vm748_vm7, %v876_v47 }
 0x4ee   : > { %v879_v49 = vld [vmem:[#allocation5] sm:$0xff] }
 0x4ef   : > { %v888_v50 = vmul.f32 %v886_v48, %v879_v49 }
 0x4f1   : > { %890 = vst.msk [vmem:[#allocation5] sm:$0xff] %vm838_vm8, %v888_v50 }
 0x4f8   : > { %v891_v51 = vld [vmem:[#allocation5] sm:$0xff] }
 0x4f9   : > { %v892_v52 = vpack.c.bf16 %v891_v51, %v891_v51 }
 0x4fb   : > { %1135 = vmatmul.msk.bf16.vlgmr.msra.gmra.mxu1 %vm407_vm0, %v892_v52 }
 0x578   : > { %v926_v54 = vpop.f32.mrf.mxu1 }
 0x579   : > { %v927_v55 = vadd.f32 %v1262_v53, %v926_v54 }
 0x57b   : > { %930 = vst.msk [vmem:[%s383_s4] sm:$0xff] %vm407_vm0, %v927_v55 }
 0x57c   : > { %1464 = shalt.err (!%p1461_p13)
}
 0x57d   : > { %1162 = dma.vmem_to_hbm [thread:$0]  (%p1673_p4), %s946_s23, 128, %s948_s25, %s932_s27  }
 0x580   : > { %v928_v56 = vpop.f32.mrf.mxu1 }
 0x581 PF: > { %s959_s11 = sand.u32 1, %s1511_s21   ;;  %p1182_p0 = pnand %p1089_p6, %p1681_p7 }
 0x582   : > { %s960_s18 = scalar_lea.sflag [#allocation8], %s959_s11 }
 0x583   : > { %p1183_p2 = pneg %p1182_p0 }
 0x585   : > { %1506 = dma.done.wait (%p1183_p2), %s960_s18, 128  }
 0x586   : > { %1508 = vsyncadd (%p1183_p2), %s960_s18, 4294967168  ;;  %s26_s26 = sadd.s32 1, %s1531_s26   ;;  %s1889_s20 = sld [smem:[#allocation21_spill]] }
 0x587   : > { %p23_p5 = scmp.ge.s32.totalorder %s26_s26, 4   ;;  %s1890_s23 = sld [smem:[#allocation24_spill]] }
 0x588   : > { %s1891_s24 = sld [smem:[#allocation22_spill]]  ;;  %s1893_s21 = smov %s1515_s22 }
 0x589   : > { %s1892_s25 = sld [smem:[#allocation23_spill]]  ;;  %25 = sbr.rel (!%p23_p5) target bundleno = 13 (0xd), region = 135 }
 0x58c   : > { %s1894_s22 = smov %s1889_s20 }
 0x58e   :  { %966 = vsyncpa [#allocation7], 1 }
 0x58f   :  { %968 = vsyncpa [#allocation7 + $0x1], 1 }
 0x590   :  { %969 = vsyncpa [#allocation10], 1 }
 0x591   :  { %971 = vsyncpa [#allocation10 + $0x1], 1 }
 0x592   :  { %972 = vsyncpa [#allocation13], 1 }
 0x593   :  { %973 = vsyncpa [#allocation8], 1 }
 0x594   :  { %975 = vsyncpa [#allocation8 + $0x1], 1 }

// kernel: tpu_custom_call.1
= control target key start
LH: loop header
LB: loop body
LE: loop exit
PB: predicated region body
PF: predicated region fallthrough
CT: control target
= control target key end

     0   :  { %s1863_s0 = inlined_call_operand.hbm [shape: f32[2,8,32], index: 0, kind: input, shape index: {}]   ;;  %s1864_s1 = inlined_call_operand.hbm [shape: f32[2,8,32], index: 1, kind: input, shape index: {}]   ;;  %s1865_s2 = inlined_call_operand.hbm [shape: bf16[32,32], index: 2, kind: input, shape index: {}]   ;;  %s1866_s3 = inlined_call_operand.hbm [shape: bf16[32,64], index: 3, kind: input, shape index: {}]   ;;  %s1867_s4 = inlined_call_operand.hbm [shape: bf16[32,32], index: 4, kind: input, shape index: {}]   ;;  %s1868_s5 = inlined_call_operand.vmem [shape: f32[1,32], index: 5, kind: input, shape index: {}]   ;;  %s1869_s6 = inlined_call_operand.hbm [shape: f32[2,8,32], index: 6, kind: output, shape index: {}]  }
   0x1   :  { %1873 = sst [smem:[#allocation25_spill]] %s1865_s2 }
   0x2   :  { %1874 = sst [smem:[#allocation26_spill]] %s1866_s3 }
   0x3   :  { %1875 = sst [smem:[#allocation27_spill]] %s1867_s4 }
   0x4   :  { %11 = vsyncpa [#allocation7], 0 }
   0x5   :  { %13 = vsyncpa [#allocation7 + $0x1], 0 }
   0x6   :  { %14 = vsyncpa [#allocation10], 0 }
   0x7   :  { %16 = vsyncpa [#allocation10 + $0x1], 0 }
   0x8   :  { %17 = vsyncpa [#allocation13], 0 }
   0x9   :  { %18 = vsyncpa [#allocation8], 0 }
   0xa   :  { %20 = vsyncpa [#allocation8 + $0x1], 0  ;;  %s1586_s21 = smov 0   ;;  %s1588_s22 = smov 0  }
   0xb   :  { %s1590_s23 = smov 0   ;;  %s1592_s24 = smov 0  }
   0xc   :  { %s1594_s25 = smov 0   ;;  %s1596_s26 = smov 0  }
   0xd LB: > { %1876 = sst [smem:[#allocation21_spill]] %s1519_s23  ;;  %s1617_s27 = sadd.s32 4294967295, %s1531_s26   ;;  %s1531_s26 = sphi %s1596_s26, %s26_s26   ;;  %s1527_s25 = sphi %s1594_s25, %s1892_s25   ;;  %s1523_s24 = sphi %s1592_s24, %s1891_s24   ;;  %s1519_s23 = sphi %s1590_s23, %s1890_s23   ;;  %s1515_s22 = sphi %s1588_s22, %s1894_s22   ;;  %s1511_s21 = sphi %s1586_s21, %s1893_s21  }
   0xe   : > { %1877 = sst [smem:[#allocation22_spill]] %s1527_s25  ;;  %p1085_p0 = scmp.ge.s32.totalorder %s1531_s26, 1 }
   0xf   : > { %p68_p1 = scmp.eq.s32.totalorder %s1617_s27, 0  ;;  %p218_p2 = scmp.lt.s32.totalorder %s1531_s26, 3 }
  0x10   : > { %s1878_s2 = sld [smem:[#allocation25_spill]]  ;;  %s1533_s8 = smov [#allocation11]  }
  0x11   : > { %p1625_p3 = pnand %p1085_p0, %p218_p2  ;;  %s231_s9 = sshll.u32 %s1533_s8, 4  ;;  %s232_s9 = int_to_ptr.vmem [resolvable:$true] %s231_s9 }
  0x12   : > { %p1089_p6 = scmp.ge.s32.totalorder %s1531_s26, 2  ;;  %s1881_s3 = sld [smem:[#allocation26_spill]] }
  0x13   : > { %p1164_p4 = pneg %p1625_p3  ;;  %s1534_s14 = smov 64  }
  0x14   : > { %s1535_s15 = smov 4   ;;  %s1536_s16 = smov [#allocation12]  }
  0x15   : > { %p1633_p5 = pnand %p1164_p4, %p68_p1  ;;  %s245_s17 = sshll.u32 %s1536_s16, 4  ;;  %s246_s17 = int_to_ptr.vmem [resolvable:$true] %s245_s17 }
  0x16   : > { %s229_s30 = sshll.u32 %s1878_s2, 4  ;;  %s1882_s4 = sld [smem:[#allocation27_spill]]  ;;  %s230_s30 = int_to_ptr.hbm [resolvable:$true] %s229_s30 }
  0x17   : > { %1167 = dma.hbm_to_vmem [thread:$0]  (!%p1633_p5), %s230_s30, 256, %s232_s9, [#allocation10], %s1534_s14, %s1534_s14, %s1535_s15  }
  0x18   : > { %s243_s13 = sshll.u32 %s1881_s3, 4  ;;  %s1537_s28 = smov [#allocation14]   ;;  %s244_s13 = int_to_ptr.hbm [resolvable:$true] %s243_s13 }
  0x19   : > { %1170 = dma.hbm_to_vmem [thread:$0]  (!%p1633_p5), %s244_s13, 256, %s246_s17, [#allocation13], %s1534_s14, %s1534_s14, %s1535_s15  }
  0x1a   : > { %s259_s29 = sshll.u32 %s1537_s28, 4  ;;  %s1084_s30 = sadd.s32 4294967294, %s1531_s26   ;;  %s260_s29 = int_to_ptr.vmem [resolvable:$true] %s259_s29 }
  0x1b   : > { %s45_s8 = sadd.s32 1, %s1527_s25  ;;  %s54_s9 = sadd.s32 1, %s1519_s23 }
  0x1c   : > { %s257_s20 = sshll.u32 %s1882_s4, 4  ;;  %p47_p7 = scmp.ge.s32.totalorder %s45_s8, 2  ;;  %s258_s20 = int_to_ptr.hbm [resolvable:$true] %s257_s20 }
  0x1d   : > { %1173 = dma.hbm_to_vmem [thread:$0]  (!%p1633_p5), %s258_s20, 256, %s260_s29, [#allocation13], %s1534_s14, %s1534_s14, %s1535_s15  }
  0x1e   : > { %p61_p8 = scmp.ne.s32.totalorder %s1519_s23, %s1515_s22  ;;  %p62_p9 = scmp.eq.s32.totalorder %s1531_s26, 0 }
  0x1f   : > { %p67_p10 = scmp.ne.s32.totalorder %s1515_s22, %s1511_s21  ;;  %s1896_s8 = smov (%p47_p7, %s45_s8), 0 }
  0x20   : > { %1883 = sst [smem:[#allocation23_spill]] %s1896_s8  ;;  %p1660_p11 = por %p62_p9, %p61_p8 }
  0x21   : > { %p1666_p12 = por %p68_p1, %p67_p10  ;;  %s49_s12 = ssub.s32 %s1527_s25, %s1896_s8 }
  0x22   : > { %p205_p13 = scmp.eq.s32.totalorder %s1617_s27, 1  ;;  %p52_p0 = scmp.eq.s32.totalorder %s49_s12, 0 }
  0x23   : > { %p211_p2 = scmp.eq.s32.totalorder %s1084_s30, 1  ;;  %p1188_p5 = scmp.lt.s32.totalorder %s1531_s26, 2 }
  0x24   : > { %p1673_p4 = por %p205_p13, %p61_p8  ;;  %s276_s16 = sand.u32 1, %s1519_s23  }
  0x25   : > { %s1679_s14 = scalar_select %p52_p0, %s1519_s23, %s54_s9  }
  0x26   : > { %p1681_p7 = por %p211_p2, %p67_p10  ;;  %s1090_s17 = sshll.u32 %s276_s16, 3 }
  0x27   : > { %1887 = sst [smem:[#allocation24_spill]] %s1679_s14  ;;  %s1091_s18 = sshll.u32 %s1527_s25, 3 }
  0x28   : > { %s285_s28 = scalar_lea.hbm %s1863_s0, %s1091_s18  ;;  %s280_s29 = scalar_lea.vmem [#allocation6], %s1090_s17 }
  0x29   : > { %s289_s30 = sshll.u32 %s280_s29, 4  ;;  %s287_s12 = sshll.u32 %s285_s28, 4  ;;  %s290_s30 = int_to_ptr.vmem [resolvable:$true] %s289_s30  ;;  %s288_s12 = int_to_ptr.hbm [resolvable:$true] %s287_s12 }
  0x2a   : > { %p1175_p8 = pnand %p1188_p5, %p1660_p11  ;;  %s305_s3 = scalar_lea.hbm %s1864_s1, %s1091_s18 }
  0x2b   : > { %s296_s4 = sand.u32 1, %s1531_s26   ;;  %s277_s8 = scalar_lea.sflag [#allocation7], %s276_s16 }
  0x2c   : > { %1177 = dma.hbm_to_vmem [thread:$0]  (!%p1175_p8), %s288_s12, 128, %s290_s30, %s277_s8  }
  0x2d   : > { %s307_s14 = sshll.u32 %s305_s3, 4  ;;  %s300_s25 = scalar_lea.vmem [#allocation9], %s1090_s17  ;;  %s308_s14 = int_to_ptr.hbm [resolvable:$true] %s307_s14 }
  0x2e   : > { %s309_s23 = sshll.u32 %s300_s25, 4  ;;  %s297_s19 = scalar_lea.sflag [#allocation10], %s296_s4  ;;  %s310_s23 = int_to_ptr.vmem [resolvable:$true] %s309_s23 }
  0x2f   : > { %1180 = dma.hbm_to_vmem [thread:$0]  (!%p1175_p8), %s308_s14, 128, %s310_s23, %s297_s19  }
  0x30   : > { %318 = sbr.rel (%p1625_p3) target bundleno = 1409 (0x581), region = 44  ;;  %s1699_s11 = sand.u32 (!%p1625_p3), 1, %s1515_s22  }
  0x31   : > { %s1702_s2 = sshll.u32 (!%p1625_p3), %s1699_s11, 3  ;;  %s321_s8 = scalar_lea.sflag (!%p1625_p3), [#allocation7], %s1699_s11 }
  0x32   : > { %s324_s3 = scalar_lea.vmem (!%p1625_p3), [#allocation6], %s1702_s2 }
  0x35   : > { %1490 = dma.done.wait (%p1666_p12), %s321_s8, 128  }
  0x36   : > { %1492 = vsyncadd (%p1666_p12), %s321_s8, 4294967168  ;;  %s330_s4 = sand.u32 1, %s1617_s27   ;;  %s334_s25 = scalar_lea.vmem [#allocation9], %s1702_s2 }
  0x37   : > { %s331_s23 = scalar_lea.sflag [#allocation10], %s330_s4 }
  0x38   : > { %1494 = dma.done.wait (%p1666_p12), %s331_s23, 128  }
  0x39   : > { %1496 = vsyncadd (%p1666_p12), %s331_s23, 4294967168 }
  0x3a   : > { %1498 = dma.done.wait (%p68_p1), [#allocation10], 256  }
  0x3b   : > { %1500 = vsyncadd (%p68_p1), [#allocation10], 4294967040 }
  0x3c   : > { %1502 = dma.done.wait (%p68_p1), [#allocation13], 512  }
  0x3d   : > { %1504 = vsyncadd (%p68_p1), [#allocation13], 4294966784  ;;  %vm407_vm0 = vcmask 261120   ;;  %v1538_v0 = vmov 0.0   ;;  %v1141_v1 = vld [vmem:[#allocation11 + $0x8] sm:$0xff]  ;;  %v1143_v2 = vld [vmem:[#allocation12 + $0x8] sm:$0xff]  ;;  %v480_v36 = vlaneseq }
  0x3e   : > { %436 = vst.msk [vmem:[#allocation5] sm:$0xff] %vm407_vm0, %v1538_v0  ;;  %v1140_v3 = vld [vmem:[#allocation11] sm:$0xff]  ;;  %v1142_v4 = vld [vmem:[#allocation12] sm:$0xff]  ;;  %417 = vmatpush.bf16.msra.mxu0 %v1141_v1  ;;  %472 = vmatpush.bf16.msra.mxu1 %v1143_v2  ;;  %vm425_vm1 = vcmask 257024   ;;  %vm490_vm2 = vcmask 64512   ;;  %s1539_s27 = smov 96  }
  0x3f   : > { %v389_v5 = vld [vmem:[%s324_s3] sm:$0xff]  ;;  %v444_v6 = vld [vmem:[%s334_s25] sm:$0xff]  ;;  %s1540_s7 = smov 120   ;;  %s1541_s10 = smov 112   ;;  %vm427_vm3 = vcmask 7168   ;;  %vm551_vm4 = vcmask 1043456  }
  0x40   : > { %v390_v7 = vpack.c.bf16 %v389_v5, %v389_v5  ;;  %v445_v8 = vpack.c.bf16 %v444_v6, %v444_v6  ;;  %s1542_s14 = smov 104   ;;  %v1543_v31 = vmov -inf   ;;  %432 = vst.msk [vmem:[#allocation4] sm:$0xff] %vm427_vm3, %v1538_v0  ;;  %v1753_v37 = vshrl.u32 %v480_v36, 7  ;;  %s1545_s16 = smov 72  }
  0x41   : > { %428 = vst.msk [vmem:[#allocation3] sm:$0xff] %vm427_vm3, %v1543_v31  ;;  %v1755_v38 = vand.u32 127, %v480_v36  ;;  %v1544_v44 = vmov 0   ;;  %s1546_s17 = smov 80   ;;  %s1547_s18 = smov 88   ;;  %vm658_vm6 = vcmask 130112  }
  0x42   : > { %418 = vmatpush.bf16.msra.mxu0 %v1140_v3  ;;  %473 = vmatpush.bf16.msra.mxu1 %v1142_v4  ;;  %429 = vst.msk [vmem:[#allocation3 + $0x8] sm:$0xff] %vm427_vm3, %v1543_v31  ;;  %s1548_s20 = smov 16   ;;  %s1549_s28 = smov 8   ;;  %vm748_vm7 = vcmask 195712   ;;  %vm838_vm8 = vcmask 261312  }
  0x43   : > { %430 = vst.msk [vmem:[#allocation3 + $0x10] sm:$0xff] %vm427_vm3, %v1543_v31  ;;  %vm488_vm5 = vcmp.ge.s32.totalorder %v1753_v37, %v1755_v38  ;;  %1259 = vset.pattern.permute.xlu0 %v1544_v44  ;;  %1261 = vset.pattern.permute.xlu1 %v1544_v44  ;;  %s1550_s29 = smov 24   ;;  %s1137_s30 = sshll.u32 %s1523_s24, 3 }
  0x44   : > { %431 = vst.msk [vmem:[#allocation3 + $0x18] sm:$0xff] %vm427_vm3, %v1543_v31  ;;  %1260 = vset.pattern.permute.xlu2 %v1544_v44  ;;  %s943_s19 = scalar_lea.hbm %s1869_s6, %s1137_s30  ;;  %s383_s4 = scalar_lea.vmem [#allocation15], %s1702_s2 }
  0x45   : > { %1109 = vmatmul.msk.bf16.vlgmr.msra.gmra.mxu0 %vm407_vm0, %v390_v7  ;;  %1118 = vmatmul.msk.bf16.vlgmr.msra.gmra.mxu1 %vm407_vm0, %v445_v8  ;;  %433 = vst.msk [vmem:[#allocation4 + $0x8] sm:$0xff] %vm427_vm3, %v1538_v0  ;;  %s945_s23 = sshll.u32 %s383_s4, 4  ;;  %s947_s25 = sshll.u32 %s943_s19, 4  ;;  %s946_s23 = int_to_ptr.vmem [resolvable:$true] %s945_s23  ;;  %s948_s25 = int_to_ptr.hbm [resolvable:$true] %s947_s25 }
  0x46   : > { %434 = vst.msk [vmem:[#allocation4 + $0x10] sm:$0xff] %vm427_vm3, %v1538_v0  ;;  %s1451_s24 = sshra.s32 %s948_s25, 4  ;;  %s1457_s2 = scalar_lea.hbm %s1869_s6, 16  ;;  %s1452_s24 = int_to_ptr.hbm [resolvable:$true] %s1451_s24 }
  0x47   : > { %435 = vst.msk [vmem:[#allocation4 + $0x18] sm:$0xff] %vm427_vm3, %v1538_v0  ;;  %p1458_p10 = scmp.lt.s32.totalorder %s1452_s24, %s1869_s6 }
  0x48   : > { %v511_v45 = vld [vmem:[#allocation3] sm:$0xff] }
  0x4a   : > { %v690_v56 = vld [vmem:[#allocation3 + $0x10] sm:$0xff] }
  0xc2   : > { %v420_v9 = vpop.f32.mrf.mxu0  ;;  %v475_v10 = vpop.f32.mrf.mxu1 }
  0xc3   : > { %v424_v11 = vpack.c.bf16 %v420_v9, %v420_v9  ;;  %v479_v12 = vpack.c.bf16 %v475_v10, %v475_v10  ;;  %v535_v9 = vld [vmem:[#allocation5] sm:$0xff] }
  0xc5   : > { %426 = vst.msk [vmem:[#allocation2] sm:$0xf] %vm425_vm1, %v424_v11  ;;  %v544_v13 = vunpack.c.l.b16 %v479_v12  ;;  %v495_v14 = vsel %vm490_vm2, %v479_v12, 0 }
  0xc6   : > { %504 = vmatpush.bf16.xpose.msra.mxu2 %v495_v14 }
  0xc7   : > { %v1729_v15 = vpack.c.b16 %v544_v13, %v544_v13 }
  0xc9   : > { %546 = vrot.lane.b32.xlu1 %v1729_v15, %s1539_s27  ;;  %s932_s27 = scalar_lea.sflag [#allocation8], %s1699_s11 }
  0xca   : > { %v422_v16 = vpop.f32.mrf.mxu0  ;;  %v477_v17 = vpop.f32.mrf.mxu1 }
  0xcc   : > { %v489_v18 = vld [vmem:[#allocation2] sm:$0xf] }
  0xcd   : > { %v571_v19 = vld [vmem:[#allocation2] sm:$0xf]  ;;  %1119 = vmatmul.msk.bf16.vlgmr.msra.gmra.mxu2 %vm490_vm2, %v489_v18 }
  0xce   : > { %v573_v20 = vunpack.c.l.b16 %v571_v19  ;;  %v661_v22 = vld [vmem:[#allocation2] sm:$0xf] }
  0xcf   : > { %v663_v23 = vunpack.c.l.b16 %v661_v22  ;;  %v751_v25 = vld [vmem:[#allocation2] sm:$0xf] }
  0xd0   : > { %v574_v21 = vpack.c.b16 %v573_v20, %v573_v20  ;;  %v753_v26 = vunpack.c.l.b16 %v751_v25 }
  0xd1   : > { %577 = vrot.lane.b32.xlu1 %v1729_v15, %s1540_s7  ;;  %v664_v24 = vpack.c.b16 %v663_v23, %v663_v23 }
  0xd2   : > { %575 = vrot.lane.b32.xlu2 %v574_v21, %s1540_s7  ;;  %v754_v27 = vpack.c.b16 %v753_v26, %v753_v26  ;;  %v707_v26 = vld [vmem:[#allocation4 + $0x10] sm:$0xff]  ;;  %s1453_s7 = scalar_lea.hbm %s1452_s24, 8 }
  0xd3   : > { %p1454_p1 = scmp.ne.s32.totalorder %s1452_s24, %s1453_s7  ;;  %p1459_p11 = scmp.lt.s32.totalorder %s1457_s2, %s1453_s7 }
  0xd5   : > { %p1455_p3 = pnand %p1454_p1, %p1673_p4  ;;  %p1460_p12 = por %p1459_p11, %p1458_p10 }
  0xd7   : > { %p1456_p9 = pneg %p1455_p3 }
  0xd9   : > { %665 = vrot.lane.b32.xlu1 %v664_v24, %s1541_s10  ;;  %p1461_p13 = pnand %p1460_p12, %p1456_p9 }
  0xda   : > { %667 = vrot.lane.b32.xlu2 %v1729_v15, %s1541_s10 }
  0xe1   : > { %755 = vrot.lane.b32.xlu1 %v754_v27, %s1542_s14 }
  0xe2   : > { %757 = vrot.lane.b32.xlu2 %v1729_v15, %s1542_s14 }
 0x12c   : > { %v1736_v28 = vpop.permute.xlu2 %575 }
 0x134   : > { %v668_v29 = vpop.permute.xlu2 %667 }
 0x135   : > { %v673_v30 = vsel %vm490_vm2, %v668_v29, 0 }
 0x136   : > { %682 = vmatpush.bf16.xpose.msrb.mxu1 %v673_v30  ;;  %v600_v30 = vld [vmem:[#allocation3 + $0x8] sm:$0xff] }
 0x13b   : > { %v547_v32 = vpop.permute.xlu1 %546 }
 0x13c   : > { %v553_v33 = vsel %vm551_vm4, %v547_v32, 0  ;;  %v758_v62 = vpop.permute.xlu2 %757 }
 0x13d   : > { %562 = vmatpush.bf16.msra.mxu3 %v553_v33  ;;  %v763_v1 = vsel %vm490_vm2, %v758_v62, 0 }
 0x143   : > { %v578_v34 = vpop.permute.xlu1 %577 }
 0x144   : > { %v583_v35 = vsel %vm490_vm2, %v578_v34, 0  ;;  %v780_v34 = vld [vmem:[#allocation3 + $0x18] sm:$0xff] }
 0x145   : > { %592 = vmatpush.bf16.xpose.msrb.mxu3 %v583_v35 }
 0x14b   : > { %v666_v39 = vpop.permute.xlu1 %665 }
 0x14c   : > { %1123 = vmatmul.msk.bf16.vlgmr.msrb.gmra.mxu1 %vm490_vm2, %v666_v39 }
 0x150   : > { %v506_v40 = vpop.f32.mrf.mxu2 }
 0x151   : > { %v510_v41 = vsel %vm488_vm5, %v506_v40, -inf }
 0x152   : > { %v512_v42 = vsel %vm490_vm2, %v510_v41, -inf }
 0x153   : > { %513 = vmax.xlane.f32.xlu0 %v512_v42  ;;  %v756_v53 = vpop.permute.xlu1 %755 }
 0x158   : > { %v508_v43 = vpop.f32.mrf.mxu2 }
 0x1c6   : > { %v514_v46 = vpop.xlane.xlu0 %513 }
 0x1c7   : > { %v515_v47 = vmax.f32 %v511_v45, %v514_v46 }
 0x1c9   : > { %v516_v48 = vsub.f32 %v511_v45, %v515_v47  ;;  %570 = vst.msk [vmem:[#allocation3] sm:$0xff] %vm427_vm3, %v515_v47  ;;  %v684_v49 = vpop.f32.mrf.mxu1  ;;  %521 = vperm.xlu0 %1259, %v515_v47  }
 0x1ca   : > { %v688_v50 = vsel %vm488_vm5, %v684_v49, -inf }
 0x1cb   : > { %v691_v51 = vsel %vm490_vm2, %v688_v50, -inf  ;;  %v517_v63 = vmul.f32 1.442695, %v516_v48 }
 0x1cc   : > { %692 = vmax.xlane.f32.xlu1 %v691_v51 }
 0x1d1   : > { %v686_v52 = vpop.f32.mrf.mxu1 }
 0x23b   : > { %v522_v54 = vpop.permute.xlu0 %521 }
 0x23c   : > { %v524_v55 = vsub.f32 %v510_v41, %v522_v54 }
 0x23e   : > { %v525_v57 = vmul.f32 1.442695, %v524_v55 }
 0x23f   : > { %v693_v58 = vpop.xlane.xlu1 %692 }
 0x240   : > { %1263 = vpow2.f32 %v525_v57  ;;  %v694_v59 = vmax.f32 %v690_v56, %v693_v58 }
 0x241   : > { %1265 = vpow2.f32 %v517_v63 }
 0x242   : > { %v695_v60 = vsub.f32 %v690_v56, %v694_v59  ;;  %750 = vst.msk [vmem:[#allocation3 + $0x10] sm:$0xff] %vm427_vm3, %v694_v59  ;;  %700 = vperm.xlu1 %1261, %v694_v59   ;;  %v527_v59 = vld [vmem:[#allocation4] sm:$0xff] }
 0x244   : > { %v696_v24 = vmul.f32 1.442695, %v695_v60 }
 0x246   : > { %v1770_v61 = vpop.eup %1263 }
 0x247   : > { %v542_v0 = vpack.c.bf16 %v1770_v61, %v1770_v61  ;;  %v1777_v2 = vpop.eup %1265  ;;  %v529_v41 = vsel %vm490_vm2, %v1770_v61, 0.0 }
 0x248   : > { %v528_v60 = vmul.f32 %v1777_v2, %v527_v59 }
 0x249   : > { %1120 = vmatmul.msk.bf16.vlgmr.msra.gmra.mxu3 %vm490_vm2, %v542_v0  ;;  %v617_v0 = vld [vmem:[#allocation4 + $0x8] sm:$0xff] }
 0x24a   : > { %772 = vmatpush.bf16.xpose.msra.mxu3 %v763_v1  ;;  %812 = vrot.lane.b32.xlu1 %v1729_v15, %s1545_s16 }
 0x252   : > { %538 = vperm.xlu1 %1261, %v1777_v2  }
 0x259   : > { %1121 = vmatmul.msk.bf16.vlgmr.msrb.gmra.mxu3 %vm490_vm2, %v1736_v28 }
 0x269   : > { %1125 = vmatmul.msk.bf16.vlgmr.msra.gmra.mxu3 %vm490_vm2, %v756_v53 }
 0x2b4   : > { %v701_v3 = vpop.permute.xlu1 %700 }
 0x2b5   : > { %v703_v4 = vsub.f32 %v688_v50, %v701_v3 }
 0x2b7   : > { %v704_v5 = vmul.f32 1.442695, %v703_v4 }
 0x2b9   : > { %1267 = vpow2.f32 %v704_v5 }
 0x2ba   : > { %1269 = vpow2.f32 %v696_v24 }
 0x2bc   : > { %v813_v6 = vpop.permute.xlu1 %812 }
 0x2bd   : > { %v818_v48 = vsel %vm551_vm4, %v813_v6, 0 }
 0x2bf   : > { %v1268_v7 = vpop.eup %1267 }
 0x2c0   : > { %v709_v8 = vsel %vm490_vm2, %v1268_v7, 0.0  ;;  %v1270_v25 = vpop.eup %1269  ;;  %v721_v40 = vpack.c.bf16 %v1268_v7, %v1268_v7 }
 0x2c1   : > { %710 = vadd.xlane.f32.xlu1 %v709_v8  ;;  %v708_v27 = vmul.f32 %v1270_v25, %v707_v26  ;;  %v797_v8 = vld [vmem:[#allocation4 + $0x18] sm:$0xff] }
 0x2c4   : > { %v539_v10 = vpop.permute.xlu1 %538 }
 0x2c5   : > { %v541_v11 = vmul.f32 %v539_v10, %v535_v9 }
 0x2cc   : > { %v564_v12 = vpop.f32.mrf.mxu3 }
 0x2cd   : > { %v568_v13 = vadd.f32 %v564_v12, %v541_v11 }
 0x2cf   : > { %569 = vst.msk [vmem:[#allocation5] sm:$0xff] %vm490_vm2, %v568_v13 }
 0x2d4   : > { %v566_v14 = vpop.f32.mrf.mxu3 }
 0x2d6   : > { %v624_v24 = vld [vmem:[#allocation5] sm:$0xff] }
 0x2dc   : > { %v594_v16 = vpop.f32.mrf.mxu3 }
 0x2dd   : > { %v598_v17 = vsel %vm488_vm5, %v594_v16, -inf }
 0x2de   : > { %v601_v18 = vsel %vm490_vm2, %v598_v17, -inf }
 0x2df   : > { %602 = vmax.xlane.f32.xlu2 %v601_v18 }
 0x2e4   : > { %v596_v19 = vpop.f32.mrf.mxu3 }
 0x2ec   : > { %v774_v20 = vpop.f32.mrf.mxu3 }
 0x2ed   : > { %v778_v21 = vsel %vm488_vm5, %v774_v20, -inf }
 0x2ee   : > { %v781_v22 = vsel %vm490_vm2, %v778_v21, -inf }
 0x2ef   : > { %782 = vmax.xlane.f32.xlu0 %v781_v22 }
 0x2f4   : > { %v776_v23 = vpop.f32.mrf.mxu3 }
 0x303   : > { %722 = vrot.lane.b32.xlu0 %v1729_v15, %s1546_s17 }
 0x334   : > { %v711_v28 = vpop.xlane.xlu1 %710 }
 0x335   : > { %v712_v29 = vadd.f32 %v711_v28, %v708_v27 }
 0x337   : > { %713 = vst.msk [vmem:[#allocation4 + $0x10] sm:$0xff] %vm427_vm3, %v712_v29 }
 0x33e   : > { %v869_v13 = vld [vmem:[#allocation4 + $0x10] sm:$0xff] }
 0x352   : > { %v603_v31 = vpop.xlane.xlu2 %602 }
 0x353   : > { %v604_v32 = vmax.f32 %v600_v30, %v603_v31 }
 0x355   : > { %v605_v33 = vsub.f32 %v600_v30, %v604_v32  ;;  %660 = vst.msk [vmem:[#allocation3 + $0x8] sm:$0xff] %vm427_vm3, %v604_v32  ;;  %610 = vperm.xlu2 %1260, %v604_v32  }
 0x357   : > { %v606_v42 = vmul.f32 1.442695, %v605_v33 }
 0x359   : > { %1271 = vpow2.f32 %v606_v42  ;;  %v1144_v42 = vld [vmem:[#allocation14] sm:$0xff] }
 0x35d   : > { %632 = vrot.lane.b32.xlu2 %v1729_v15, %s1547_s18 }
 0x35f   : > { %v1272_v15 = vpop.eup %1271 }
 0x360   : > { %v618_v1 = vmul.f32 %v1272_v15, %v617_v0 }
 0x362   : > { %v783_v35 = vpop.xlane.xlu0 %782 }
 0x363   : > { %v784_v36 = vmax.f32 %v780_v34, %v783_v35 }
 0x365   : > { %v785_v37 = vsub.f32 %v780_v34, %v784_v36  ;;  %840 = vst.msk [vmem:[#allocation3 + $0x18] sm:$0xff] %vm427_vm3, %v784_v36  ;;  %790 = vperm.xlu2 %1260, %v784_v36  }
 0x367   : > { %v786_v5 = vmul.f32 1.442695, %v785_v37 }
 0x375   : > { %v723_v38 = vpop.permute.xlu0 %722 }
 0x376   : > { %v728_v39 = vsel %vm551_vm4, %v723_v38, 0 }
 0x377   : > { %737 = vmatpush.bf16.msrb.mxu2 %v728_v39 }
 0x37a   : > { %1124 = vmatmul.msk.bf16.vlgmr.msrb.gmra.mxu2 %vm490_vm2, %v721_v40 }
 0x38e   : > { %530 = vadd.xlane.f32.xlu2 %v529_v41  ;;  %v1145_v41 = vld [vmem:[#allocation14 + $0x8] sm:$0xff] }
 0x38f   : > { %923 = vmatpush.bf16.msra.mxu1 %v1145_v41 }
 0x393   : > { %924 = vmatpush.bf16.msra.mxu1 %v1144_v42 }
 0x3a6   : > { %627 = vperm.xlu2 %1260, %v1272_v15  }
 0x3af   : > { %v611_v43 = vpop.permute.xlu2 %610 }
 0x3b0   : > { %v613_v44 = vsub.f32 %v598_v17, %v611_v43 }
 0x3b2   : > { %v614_v45 = vmul.f32 1.442695, %v613_v44 }
 0x3b4   : > { %1273 = vpow2.f32 %v614_v45 }
 0x3b7   : > { %v633_v46 = vpop.permute.xlu2 %632 }
 0x3b8   : > { %v638_v47 = vsel %vm551_vm4, %v633_v46, 0 }
 0x3b9   : > { %647 = vmatpush.bf16.msrb.mxu0 %v638_v47 }
 0x3ba   : > { %v1274_v49 = vpop.eup %1273 }
 0x3bb   : > { %v619_v50 = vsel %vm490_vm2, %v1274_v49, 0.0  ;;  %v631_v51 = vpack.c.bf16 %v1274_v49, %v1274_v49 }
 0x3bc   : > { %620 = vadd.xlane.f32.xlu0 %v619_v50 }
 0x3bd   : > { %827 = vmatpush.bf16.msra.mxu0 %v818_v48 }
 0x3be   : > { %1122 = vmatmul.msk.bf16.vlgmr.msrb.gmra.mxu0 %vm490_vm2, %v631_v51 }
 0x3bf   : > { %v791_v52 = vpop.permute.xlu2 %790 }
 0x3c0   : > { %v793_v53 = vsub.f32 %v778_v21, %v791_v52 }
 0x3c2   : > { %v794_v54 = vmul.f32 1.442695, %v793_v53  ;;  %v1262_v53 = vld [vmem:[%s1868_s5] ss:$0 sm:$0xff] }
 0x3c4   : > { %1275 = vpow2.f32 %v794_v54 }
 0x3c5   : > { %1277 = vpow2.f32 %v786_v5 }
 0x3ca   : > { %v1276_v55 = vpop.eup %1275 }
 0x3cb   : > { %v811_v56 = vpack.c.bf16 %v1276_v55, %v1276_v55  ;;  %v799_v57 = vsel %vm490_vm2, %v1276_v55, 0.0  ;;  %v1278_v7 = vpop.eup %1277 }
 0x3cc   : > { %800 = vadd.xlane.f32.xlu1 %v799_v57  ;;  %v798_v9 = vmul.f32 %v1278_v7, %v797_v8 }
 0x3ce   : > { %1126 = vmatmul.msk.bf16.vlgmr.msra.gmra.mxu0 %vm490_vm2, %v811_v56 }
 0x3e5   : > { %717 = vperm.xlu1 %1261, %v1270_v25  }
 0x3fd   : > { %v739_v58 = vpop.f32.mrf.mxu2 }
 0x3fe   : > { %744 = vrot.lane.b32.xlu2 %v739_v58, %s1548_s20 }
 0x401   : > { %v531_v61 = vpop.xlane.xlu2 %530 }
 0x402   : > { %v532_v62 = vadd.f32 %v531_v61, %v528_v60 }
 0x404   : > { %534 = vst.msk [vmem:[#allocation4] sm:$0xff] %vm427_vm3, %v532_v62 }
 0x405   : > { %v741_v63 = vpop.f32.mrf.mxu2 }
 0x409   : > { %v628_v23 = vpop.permute.xlu2 %627 }
 0x40a   : > { %v630_v25 = vmul.f32 %v628_v23, %v624_v24 }
 0x40b   : > { %v845_v11 = vld [vmem:[#allocation4] sm:$0xff] }
 0x40c   : > { %1279 = vrcp.f32 %v845_v11 }
 0x412   : > { %v1280_v17 = vpop.eup %1279 }
 0x42f   : > { %v621_v3 = vpop.xlane.xlu0 %620 }
 0x430   : > { %v622_v4 = vadd.f32 %v621_v3, %v618_v1 }
 0x432   : > { %623 = vst.msk [vmem:[#allocation4 + $0x8] sm:$0xff] %vm427_vm3, %v622_v4 }
 0x439   : > { %v857_v16 = vld [vmem:[#allocation4 + $0x8] sm:$0xff] }
 0x43b   : > { %v649_v6 = vpop.f32.mrf.mxu0 }
 0x43c   : > { %654 = vrot.lane.b32.xlu0 %v649_v6, %s1549_s28 }
 0x43f   : > { %v801_v2 = vpop.xlane.xlu1 %800 }
 0x440   : > { %v802_v10 = vadd.f32 %v801_v2, %v798_v9 }
 0x442   : > { %803 = vst.msk [vmem:[#allocation4 + $0x18] sm:$0xff] %vm427_vm3, %v802_v10 }
 0x443   : > { %v651_v12 = vpop.f32.mrf.mxu0 }
 0x444   : > { %807 = vperm.xlu0 %1259, %v1278_v7  }
 0x449   : > { %v881_v14 = vld [vmem:[#allocation4 + $0x18] sm:$0xff] }
 0x44a   : > { %1281 = vrcp.f32 %v881_v14 }
 0x44b   : > { %v829_v18 = vpop.f32.mrf.mxu0  ;;  %1283 = vrcp.f32 %v869_v13 }
 0x44c   : > { %849 = vperm.xlu0 %1259, %v1280_v17   ;;  %834 = vrot.lane.b32.xlu2 %v829_v18, %s1550_s29  ;;  %1285 = vrcp.f32 %v857_v16 }
 0x450   : > { %v1282_v19 = vpop.eup %1281 }
 0x451   : > { %v1284_v20 = vpop.eup %1283  ;;  %885 = vperm.xlu1 %1261, %v1282_v19  }
 0x452   : > { %v1286_v21 = vpop.eup %1285 }
 0x453   : > { %v831_v22 = vpop.f32.mrf.mxu0 }
 0x454   : > { %873 = vperm.xlu0 %1259, %v1284_v20   ;;  %861 = vperm.xlu2 %1260, %v1286_v21  }
 0x457   : > { %v718_v28 = vpop.permute.xlu1 %717 }
 0x458   : > { %v745_v31 = vpop.permute.xlu2 %744 }
 0x4a6   : > { %v835_v36 = vpop.permute.xlu2 %834 }
 0x4ae   : > { %v655_v26 = vpop.permute.xlu0 %654  ;;  %v862_v15 = vpop.permute.xlu2 %861 }
 0x4af   : > { %v657_v27 = vadd.f32 %v655_v26, %v630_v25 }
 0x4b1   : > { %659 = vst.msk [vmem:[#allocation5] sm:$0xff] %vm658_vm6, %v657_v27 }
 0x4b6   : > { %v808_v34 = vpop.permute.xlu0 %807 }
 0x4b8   : > { %v714_v29 = vld [vmem:[#allocation5] sm:$0xff] }
 0x4b9   : > { %v720_v30 = vmul.f32 %v718_v28, %v714_v29 }
 0x4bb   : > { %v747_v32 = vadd.f32 %v745_v31, %v720_v30 }
 0x4bd   : > { %749 = vst.msk [vmem:[#allocation5] sm:$0xff] %vm748_vm7, %v747_v32 }
 0x4be   : > { %v850_v38 = vpop.permute.xlu0 %849 }
 0x4c3   : > { %v886_v48 = vpop.permute.xlu1 %885 }
 0x4c4   : > { %v804_v33 = vld [vmem:[#allocation5] sm:$0xff] }
 0x4c5   : > { %v810_v35 = vmul.f32 %v808_v34, %v804_v33 }
 0x4c6   : > { %v874_v45 = vpop.permute.xlu0 %873 }
 0x4c7   : > { %v837_v37 = vadd.f32 %v835_v36, %v810_v35 }
 0x4c9   : > { %839 = vst.msk [vmem:[#allocation5] sm:$0xff] %vm838_vm8, %v837_v37 }
 0x4d0   : > { %v844_v39 = vld [vmem:[#allocation5] sm:$0xff] }
 0x4d1   : > { %v852_v40 = vmul.f32 %v850_v38, %v844_v39 }
 0x4d3   : > { %854 = vst.msk [vmem:[#allocation5] sm:$0xff] %vm490_vm2, %v852_v40 }
 0x4da   : > { %v855_v43 = vld [vmem:[#allocation5] sm:$0xff] }
 0x4db   : > { %v864_v44 = vmul.f32 %v862_v15, %v855_v43 }
 0x4dd   : > { %866 = vst.msk [vmem:[#allocation5] sm:$0xff] %vm658_vm6, %v864_v44 }
 0x4e4   : > { %v867_v46 = vld [vmem:[#allocation5] sm:$0xff] }
 0x4e5   : > { %v876_v47 = vmul.f32 %v874_v45, %v867_v46 }
 0x4e7   : > { %878 = vst.msk [vmem:[#allocation5] sm:$0xff] %vm748_vm7, %v876_v47 }
 0x4ee   : > { %v879_v49 = vld [vmem:[#allocation5] sm:$0xff] }
 0x4ef   : > { %v888_v50 = vmul.f32 %v886_v48, %v879_v49 }
 0x4f1   : > { %890 = vst.msk [vmem:[#allocation5] sm:$0xff] %vm838_vm8, %v888_v50 }
 0x4f8   : > { %v891_v51 = vld [vmem:[#allocation5] sm:$0xff] }
 0x4f9   : > { %v892_v52 = vpack.c.bf16 %v891_v51, %v891_v51 }
 0x4fb   : > { %1135 = vmatmul.msk.bf16.vlgmr.msra.gmra.mxu1 %vm407_vm0, %v892_v52 }
 0x578   : > { %v926_v54 = vpop.f32.mrf.mxu1 }
 0x579   : > { %v927_v55 = vadd.f32 %v1262_v53, %v926_v54 }
 0x57b   : > { %930 = vst.msk [vmem:[%s383_s4] sm:$0xff] %vm407_vm0, %v927_v55 }
 0x57c   : > { %1464 = shalt.err (!%p1461_p13)
}
 0x57d   : > { %1162 = dma.vmem_to_hbm [thread:$0]  (%p1673_p4), %s946_s23, 128, %s948_s25, %s932_s27  }
 0x580   : > { %v928_v56 = vpop.f32.mrf.mxu1 }
 0x581 PF: > { %s959_s11 = sand.u32 1, %s1511_s21   ;;  %p1182_p0 = pnand %p1089_p6, %p1681_p7 }
 0x582   : > { %s960_s18 = scalar_lea.sflag [#allocation8], %s959_s11 }
 0x583   : > { %p1183_p2 = pneg %p1182_p0 }
 0x585   : > { %1506 = dma.done.wait (%p1183_p2), %s960_s18, 128  }
 0x586   : > { %1508 = vsyncadd (%p1183_p2), %s960_s18, 4294967168  ;;  %s26_s26 = sadd.s32 1, %s1531_s26   ;;  %s1889_s20 = sld [smem:[#allocation21_spill]] }
 0x587   : > { %p23_p5 = scmp.ge.s32.totalorder %s26_s26, 4   ;;  %s1890_s23 = sld [smem:[#allocation24_spill]] }
 0x588   : > { %s1891_s24 = sld [smem:[#allocation22_spill]]  ;;  %s1893_s21 = smov %s1515_s22 }
 0x589   : > { %s1892_s25 = sld [smem:[#allocation23_spill]]  ;;  %25 = sbr.rel (!%p23_p5) target bundleno = 13 (0xd), region = 135 }
 0x58c   : > { %s1894_s22 = smov %s1889_s20 }
 0x58e   :  { %966 = vsyncpa [#allocation7], 1 }
 0x58f   :  { %968 = vsyncpa [#allocation7 + $0x1], 1 }
 0x590   :  { %969 = vsyncpa [#allocation10], 1 }
 0x591   :  { %971 = vsyncpa [#allocation10 + $0x1], 1 }
 0x592   :  { %972 = vsyncpa [#allocation13], 1 }
 0x593   :  { %973 = vsyncpa [#allocation8], 1 }
 0x594   :  { %975 = vsyncpa [#allocation8 + $0x1], 1 }

</bundles_post_ra>
